<compile_context>
chip_gen: v6e
topology: v6e:2x2x1
jax: 0.10.0
libtpu: 0.0.40
codegen_flags: <defaults>
</compile_context>

<pallas_src>
import math

import jax
import jax.numpy as jnp
from jax.experimental import pallas as pl
from jax.experimental.pallas import tpu as pltpu

_INV_SQRT2 = 0.7071067811865476
_HI = jax.lax.Precision.HIGHEST


# ----------------------------- shared math helpers ---------------------------
def _erf(x):
    # Abramowitz & Stegun 7.1.26 rational approximation (|err| < 1.5e-7),
    # built only from ops guaranteed to lower on the TPU VPU/EUP.
    a1, a2, a3, a4, a5 = (0.254829592, -0.284496736, 1.421413741,
                          -1.453152027, 1.061405429)
    p = 0.3275911
    s = jnp.where(x >= 0.0, 1.0, -1.0)
    z = jnp.abs(x)
    t = 1.0 / (1.0 + p * z)
    poly = ((((a5 * t + a4) * t + a3) * t + a2) * t + a1) * t
    return s * (1.0 - poly * jnp.exp(-z * z))


def _gelu_exact(x):
    # PyTorch F.gelu default (exact, erf-based).
    return 0.5 * x * (1.0 + _erf(x * _INV_SQRT2))


def _sigmoid_approx(x):
    # In-kernel sigmoid with the divide pushed onto the EUP slot.
    return pl.reciprocal(1.0 + jnp.exp(-x), approx=True)


# ------------------------------ fused kernel ----------------------------------
def linoss_forward_kernel(x_ref, enc_wt_ref, enc_b_ref,
                          a2_ref, steps2_ref, bt_ref, ct_ref,
                          d_ref, wg_ref, bg_ref,
                          head_wt_ref, head_b_ref, o_ref, h_ref):
    L = x_ref.shape[0]
    H = enc_wt_ref.shape[1]
    twoP = bt_ref.shape[-1]

    blk = pl.program_id(1)
    last = pl.num_programs(1) - 1

    # ---- encoder (first block iteration of each sequence only) ----
    @pl.when(blk == 0)
    def _():
        h_ref[...] = (jnp.dot(x_ref[...].astype(jnp.bfloat16), enc_wt_ref[...],
                              preferred_element_type=jnp.float32)
                      + enc_b_ref[...])                              # (L, H)

    h = h_ref[...]
    skip = h

    # ---- LayerNorm over H (no affine, eps=1e-5) ----
    mu = jnp.mean(h, axis=-1, keepdims=True)
    var = jnp.mean((h - mu) ** 2, axis=-1, keepdims=True)
    hn = (h - mu) * jax.lax.rsqrt(var + 1e-5)

    # ---- LinOSS-IM SSM ----
    # A / steps arrive pre-duplicated as [v | v] of shape (1, 2P) so the
    # packed [re | im] columns share one vectorized scan.
    A = jnp.maximum(a2_ref[...], 0.0)                     # relu(A_diag)
    step = 1.0 / (1.0 + jnp.exp(-steps2_ref[...]))        # exact: feeds M^d

    # Bu = hn @ [B_re^T | B_im^T]  -> (L, 2P) = [Bu_re | Bu_im]
    Bu = jnp.dot(hn.astype(jnp.bfloat16), bt_ref[...],
                 preferred_element_type=jnp.float32)

    schur = 1.0 / (1.0 + step * step * A)                 # exact: feeds M^d
    m11 = 1.0 - step * step * A * schur
    m12 = -step * A * schur
    m21 = step * schur
    m22 = schur

    f1 = m11 * Bu * step                                  # (L, 2P)
    f2 = m21 * Bu * step                                  # (L, 2P)

    # ---- lane-packed log-depth (Hillis-Steele) scan of s_t = M s_{t-1} + F_t
    # carry b = [b1 | b2] as one (L, 4P) slab; matrix powers packed as
    # Pa = [p11 | p22], Pb = [p12 | p21]; half-swap is a lane roll by 2P.
    b = jnp.concatenate([f1, f2], axis=-1)                # (L, 4P)
    Pa = jnp.concatenate([m11, m22], axis=-1)             # (1, 4P)
    Pb = jnp.concatenate([m12, m21], axis=-1)             # (1, 4P)

    row = jax.lax.broadcasted_iota(jnp.int32, (L, 1), 0)  # built once

    d = 1
    while d < L:
        # exact time-shift: b_shift[t] = b[t-d], zero-padded (XLU roll + mask)
        bs = jnp.where(row >= d, pltpu.roll(b, shift=d, axis=0), 0.0)
        bs_swap = pltpu.roll(bs, shift=twoP, axis=1)       # [b2s | b1s]
        b = b + Pa * bs + Pb * bs_swap
        # square the per-channel 2x2 matrix power for the next level
        Pa_swap = pltpu.roll(Pa, shift=twoP, axis=1)       # [p22 | p11]
        Pb_swap = pltpu.roll(Pb, shift=twoP, axis=1)       # [p21 | p12]
        Na = Pa * Pa + Pb * Pb_swap                        # [n11 | n22]
        Nb = Pb * (Pa + Pa_swap)                           # [n12 | n21]
        Pa, Pb = Na, Nb
        d *= 2

    ys = b[:, twoP:]                                       # (L, 2P) = [ys_re | ys_im]

    # Re(ys @ C^T) + D*u  via one packed dot with [[C_re^T], [-C_im^T]]
    ssm = (jnp.dot(ys.astype(jnp.bfloat16), ct_ref[...],
                   preferred_element_type=jnp.float32)
           + hn * d_ref[...])                              # (L, H)

    # --- GELU (exact) -> GLU -> residual (dropout = identity) ---
    g = _gelu_exact(ssm)
    hh = (jnp.dot(g.astype(jnp.bfloat16), wg_ref[...],
                  preferred_element_type=jnp.float32)
          + bg_ref[...])                                   # (L, 2H) = [h1 | h2]
    h_new = skip + hh[:, :H] * _sigmoid_approx(hh[:, H:])
    h_ref[...] = h_new

    # ---- classification head on the last block iteration ----
    @pl.when(blk == last)
    def _():
        m = jnp.mean(h_new, axis=0, keepdims=True)         # (1, H)
        logits = (jnp.dot(m.astype(jnp.bfloat16), head_wt_ref[...],
                          preferred_element_type=jnp.float32)
                  + head_b_ref[...])                       # (1, OUT)
        z = logits - jnp.max(logits, axis=-1, keepdims=True)
        e = jnp.exp(z)
        # exact divide so probabilities sum to 1 (tiny vector, essentially free)
        o_ref[...] = e / jnp.sum(e, axis=-1, keepdims=True)


# --------------------------------- wrapper ------------------------------------
@jax.jit
def linoss_forward_pallas(x, pk):
    B, L, N = x.shape
    H = pk["enc_wt"].shape[1]
    twoP = pk["Bt"].shape[-1]
    num_blocks = pk["Bt"].shape[0]
    out_dim = pk["head_wt"].shape[1]

    in_specs = [
        pl.BlockSpec((None, L, N), lambda b, k: (b, 0, 0)),        # x
        pl.BlockSpec((N, H), lambda b, k: (0, 0)),                 # enc_wt (resident)
        pl.BlockSpec((1, H), lambda b, k: (0, 0)),                 # enc_b
        pl.BlockSpec((None, 1, twoP), lambda b, k: (k, 0, 0)),     # A2   (per block)
        pl.BlockSpec((None, 1, twoP), lambda b, k: (k, 0, 0)),     # steps2
        pl.BlockSpec((None, H, twoP), lambda b, k: (k, 0, 0)),     # Bt
        pl.BlockSpec((None, twoP, H), lambda b, k: (k, 0, 0)),     # Ct
        pl.BlockSpec((None, 1, H), lambda b, k: (k, 0, 0)),        # D
        pl.BlockSpec((None, H, 2 * H), lambda b, k: (k, 0, 0)),    # Wg
        pl.BlockSpec((None, 1, 2 * H), lambda b, k: (k, 0, 0)),    # bg
        pl.BlockSpec((H, out_dim), lambda b, k: (0, 0)),           # head_wt
        pl.BlockSpec((1, out_dim), lambda b, k: (0, 0)),           # head_b
    ]
    out_spec = pl.BlockSpec((None, 1, out_dim), lambda b, k: (b, 0, 0))

    probs = pl.pallas_call(
        linoss_forward_kernel,
        grid=(B, num_blocks),
        out_shape=jax.ShapeDtypeStruct((B, 1, out_dim), jnp.float32),
        in_specs=in_specs,
        out_specs=out_spec,
        scratch_shapes=[pltpu.VMEM((L, H), jnp.float32)],   # h carried across blocks
        compiler_params=pltpu.CompilerParams(
            dimension_semantics=("parallel", "arbitrary"),
            vmem_limit_bytes=32 * 1024 * 1024),
    )(x, pk["enc_wt"], pk["enc_b"],
      pk["A2"], pk["steps2"], pk["Bt"], pk["Ct"],
      pk["D"], pk["Wg"], pk["bg"],
      pk["head_wt"], pk["head_b"])
    return probs.reshape(B, out_dim)


def pack_params(params):
    """One-time packing / pre-transposition of the PyTorch-layout params.
    MXU-facing weights are pre-cast to bf16 (DMA/VMEM savings; accumulation
    stays f32 via preferred_element_type)."""
    bf16 = jnp.bfloat16

    def stk(fn):
        return jnp.stack([fn(bp) for bp in params["blocks"]], axis=0)

    return dict(
        enc_wt=params["enc_w"].T.astype(bf16),                              # (N, H)
        enc_b=params["enc_b"],                                              # (1, H)
        A2=stk(lambda bp: jnp.concatenate([bp["A"], bp["A"]], axis=-1)),    # (NB,1,2P)
        steps2=stk(lambda bp: jnp.concatenate([bp["steps"], bp["steps"]], axis=-1)),
        Bt=stk(lambda bp: jnp.concatenate([bp["B_re"].T, bp["B_im"].T],
                                          axis=-1)).astype(bf16),           # (NB,H,2P)
        Ct=stk(lambda bp: jnp.concatenate([bp["C_re"].T, -bp["C_im"].T],
                                          axis=0)).astype(bf16),            # (NB,2P,H)
        D=stk(lambda bp: bp["D"]),                                          # (NB,1,H)
        Wg=stk(lambda bp: jnp.concatenate([bp["w1"].T, bp["w2"].T],
                                          axis=-1)).astype(bf16),           # (NB,H,2H)
        bg=stk(lambda bp: jnp.concatenate([bp["b1"], bp["b2"]], axis=-1)),  # (NB,1,2H)
        head_wt=params["head_w"].T.astype(bf16),                            # (H, OUT)
        head_b=params["head_b"],                                            # (1, OUT)
    )


# --------------------------- pure-JAX reference -------------------------------
def _ref_block(x, bp):
    skip = x
    mu = jnp.mean(x, axis=-1, keepdims=True)
    var = jnp.mean((x - mu) ** 2, axis=-1, keepdims=True)
    xn = (x - mu) * jax.lax.rsqrt(var + 1e-5)
    A = jnp.maximum(bp["A"][0], 0.0)
    step = jax.nn.sigmoid(bp["steps"][0])
    Bu_re = jnp.dot(xn, bp["B_re"].T, precision=_HI)
    Bu_im = jnp.dot(xn, bp["B_im"].T, precision=_HI)
    schur = 1.0 / (1.0 + step * step * A)
    M11 = 1.0 - step * step * A * schur
    M12 = -step * A * schur
    M21 = step * schur
    M22 = schur
    F1r, F2r = M11 * Bu_re * step, M21 * Bu_re * step
    F1i, F2i = M11 * Bu_im * step, M21 * Bu_im * step

    def scan_fn(carry, f):
        b1r, b2r, b1i, b2i = carry
        f1r, f2r, f1i, f2i = f
        n1r = M11 * b1r + M12 * b2r + f1r
        n2r = M21 * b1r + M22 * b2r + f2r
        n1i = M11 * b1i + M12 * b2i + f1i
        n2i = M21 * b1i + M22 * b2i + f2i
        return (n1r, n2r, n1i, n2i), (n2r, n2i)

    init = (F1r[0], F2r[0], F1i[0], F2i[0])
    _, (tail_r, tail_i) = jax.lax.scan(scan_fn, init,
                                       (F1r[1:], F2r[1:], F1i[1:], F2i[1:]))
    ys_r = jnp.concatenate([F2r[:1], tail_r], axis=0)
    ys_i = jnp.concatenate([F2i[:1], tail_i], axis=0)
    ys = (jnp.dot(ys_r, bp["C_re"].T, precision=_HI)
          - jnp.dot(ys_i, bp["C_im"].T, precision=_HI))
    ssm = ys + xn * bp["D"][0]
    g = _gelu_exact(ssm)
    h1 = jnp.dot(g, bp["w1"].T, precision=_HI) + bp["b1"][0]
    h2 = jnp.dot(g, bp["w2"].T, precision=_HI) + bp["b2"][0]
    return skip + h1 * jax.nn.sigmoid(h2)


def linoss_forward_ref(x, params):
    h = jnp.dot(x, params["enc_w"].T, precision=_HI) + params["enc_b"][0]
    for bp in params["blocks"]:
        h = _ref_block(h, bp)
    m = jnp.mean(h, axis=0)
    logits = jnp.dot(m, params["head_w"].T, precision=_HI) + params["head_b"][0]
    z = logits - jnp.max(logits)
    e = jnp.exp(z)
    return e / jnp.sum(e)


# --------------------------------- params ------------------------------------
def init_params(key, N, H, P, OUT, num_blocks):
    keys = jax.random.split(key, 4 + num_blocks)
    enc_w = jax.random.uniform(keys[0], (H, N), jnp.float32, -1.0, 1.0) / math.sqrt(N)
    enc_b = jax.random.uniform(keys[1], (1, H), jnp.float32, -0.1, 0.1)
    head_w = jax.random.uniform(keys[2], (OUT, H), jnp.float32, -1.0, 1.0) / math.sqrt(H)
    head_b = jax.random.uniform(keys[3], (1, OUT), jnp.float32, -0.1, 0.1)
    blocks = []
    for i in range(num_blocks):
        bk = jax.random.split(keys[4 + i], 9)
        A = jax.random.uniform(bk[0], (1, P), jnp.float32, 0.0, 1.0)
        B = jax.random.uniform(bk[1], (P, H, 2), jnp.float32, -1.0, 1.0) / math.sqrt(H)
        C = jax.random.uniform(bk[2], (H, P, 2), jnp.float32, -1.0, 1.0) / math.sqrt(P)
        D = jax.random.normal(bk[3], (1, H), jnp.float32)
        steps = jax.random.uniform(bk[4], (1, P), jnp.float32, 0.0, 1.0)
        w1 = jax.random.uniform(bk[5], (H, H), jnp.float32, -1.0, 1.0) / math.sqrt(H)
        b1 = jax.random.uniform(bk[6], (1, H), jnp.float32, -0.1, 0.1)
        w2 = jax.random.uniform(bk[7], (H, H), jnp.float32, -1.0, 1.0) / math.sqrt(H)
        b2 = jax.random.uniform(bk[8], (1, H), jnp.float32, -0.1, 0.1)
        blocks.append(dict(A=A, steps=steps,
                           B_re=B[..., 0], B_im=B[..., 1],
                           C_re=C[..., 0], C_im=C[..., 1],
                           D=D, w1=w1, b1=b1, w2=w2, b2=b2))
    return dict(enc_w=enc_w, enc_b=enc_b, head_w=head_w, head_b=head_b,
                blocks=blocks)


# ----------------------------------- main -------------------------------------
if __name__ == "__main__":
    B, L, N, H, P, OUT = 4, 16, 8, 32, 32, 8   # batch, seq len, in dim, hidden, ssm_size, classes
    NUM_BLOCKS = 2

    key = jax.random.PRNGKey(0)
    kp, kx = jax.random.split(key)
    params = init_params(kp, N, H, P, OUT, NUM_BLOCKS)
    packed = pack_params(params)               # pre-transposed / packed / bf16, built once
    x = jax.random.normal(kx, (B, L, N), jnp.float32)

    y = linoss_forward_pallas(x, packed)
    jax.block_until_ready(y)

    y_ref = jnp.stack([linoss_forward_ref(x[i], params) for i in range(B)], axis=0)
    jax.block_until_ready(y_ref)

    max_diff = float(jnp.max(jnp.abs(y - y_ref)))
    assert y.shape == (B, OUT)
    # Kernel matmuls use bf16 operands with f32 accumulation; compare against
    # the f32 (HIGHEST-precision) reference at a bf16-appropriate tolerance.
    assert max_diff < 2e-2, f"mismatch vs reference: max|diff|={max_diff}"
    print("KERNEL_OK")
</pallas_src>

<mosaic_0001>
module attributes {stable_mosaic.version = 11 : i64} {
  func.func @linoss_forward_kernel(%arg0: i32, %arg1: i32, %arg2: memref<1x16x8xf32, #tpu.memory_space<vmem>>, %arg3: memref<8x32xbf16, #tpu.memory_space<vmem>>, %arg4: memref<1x32xf32, #tpu.memory_space<vmem>>, %arg5: memref<1x1x64xf32, #tpu.memory_space<vmem>>, %arg6: memref<1x1x64xf32, #tpu.memory_space<vmem>>, %arg7: memref<1x32x64xbf16, #tpu.memory_space<vmem>>, %arg8: memref<1x64x32xbf16, #tpu.memory_space<vmem>>, %arg9: memref<1x1x32xf32, #tpu.memory_space<vmem>>, %arg10: memref<1x32x64xbf16, #tpu.memory_space<vmem>>, %arg11: memref<1x1x64xf32, #tpu.memory_space<vmem>>, %arg12: memref<32x8xbf16, #tpu.memory_space<vmem>>, %arg13: memref<1x8xf32, #tpu.memory_space<vmem>>, %arg14: memref<1x1x8xf32, #tpu.memory_space<vmem>>, %arg15: memref<16x32xf32, #tpu.memory_space<vmem>>) attributes {dimension_semantics = [#tpu.dimension_semantics<parallel>, #tpu.dimension_semantics<arbitrary>], iteration_bounds = array<i64: 4, 2>, scalar_prefetch = 0 : i64, scratch_operands = 1 : i64, tpu.core_type = #tpu.core_type<tc>, window_params = [{transform_indices = @transform_0, window_bounds = array<i64: 1, 16, 8>}, {pipeline_mode = #tpu.pipeline_mode<synchronous>, transform_indices = @transform_1, window_bounds = array<i64: 8, 32>}, {pipeline_mode = #tpu.pipeline_mode<synchronous>, transform_indices = @transform_2, window_bounds = array<i64: 1, 32>}, {transform_indices = @transform_3, window_bounds = array<i64: 1, 1, 64>}, {transform_indices = @transform_4, window_bounds = array<i64: 1, 1, 64>}, {transform_indices = @transform_5, window_bounds = array<i64: 1, 32, 64>}, {transform_indices = @transform_6, window_bounds = array<i64: 1, 64, 32>}, {transform_indices = @transform_7, window_bounds = array<i64: 1, 1, 32>}, {transform_indices = @transform_8, window_bounds = array<i64: 1, 32, 64>}, {transform_indices = @transform_9, window_bounds = array<i64: 1, 1, 64>}, {pipeline_mode = #tpu.pipeline_mode<synchronous>, transform_indices = @transform_10, window_bounds = array<i64: 32, 8>}, {pipeline_mode = #tpu.pipeline_mode<synchronous>, transform_indices = @transform_11, window_bounds = array<i64: 1, 8>}, {transform_indices = @transform_12, window_bounds = array<i64: 1, 1, 8>}]} {
    %c0_i32 = arith.constant 0 : i32
    %0 = arith.cmpi eq, %arg1, %c0_i32 : i32
    %1 = arith.extui %0 : i1 to i32
    %c0_i32_0 = arith.constant 0 : i32
    %2 = arith.cmpi ne, %1, %c0_i32_0 : i32
    scf.if %2 {
      %c0_77 = arith.constant 0 : index
      %c0_78 = arith.constant 0 : index
      %c0_79 = arith.constant 0 : index
      %217 = vector.load %arg2[%c0_77, %c0_78, %c0_79] : memref<1x16x8xf32, #tpu.memory_space<vmem>>, vector<1x16x8xf32>
      %218 = vector.shape_cast %217 : vector<1x16x8xf32> to vector<16x8xf32>
      %219 = arith.truncf %218 : vector<16x8xf32> to vector<16x8xbf16>
      %c0_80 = arith.constant 0 : index
      %c0_81 = arith.constant 0 : index
      %220 = vector.load %arg3[%c0_80, %c0_81] : memref<8x32xbf16, #tpu.memory_space<vmem>>, vector<8x32xbf16>
      %cst_82 = arith.constant dense<0.000000e+00> : vector<16x32xf32>
      %221 = tpu.matmul %219, %220, %cst_82 {dimension_numbers = #tpu.dot_dimension_numbers<[1], [0], [0], [1], [0, 0, 1, 1], [], []>} : vector<16x8xbf16>, vector<8x32xbf16>, vector<16x32xf32> -> vector<16x32xf32>
      %c0_83 = arith.constant 0 : index
      %c0_84 = arith.constant 0 : index
      %222 = vector.load %arg4[%c0_83, %c0_84] : memref<1x32xf32, #tpu.memory_space<vmem>>, vector<1x32xf32>
      %223 = vector.broadcast %222 : vector<1x32xf32> to vector<16x32xf32>
      %224 = arith.addf %221, %223 : vector<16x32xf32>
      %c0_85 = arith.constant 0 : index
      %c0_86 = arith.constant 0 : index
      %225 = vector.load %arg15[%c0_85, %c0_86] : memref<16x32xf32, #tpu.memory_space<vmem>>, vector<16x32xf32>
      tpu.vector_store %arg15[%c0_85, %c0_86], %224 {strides = array<i32>} : memref<16x32xf32, #tpu.memory_space<vmem>>, vector<16x32xf32>,
    } else {
    }
    %c0 = arith.constant 0 : index
    %c0_1 = arith.constant 0 : index
    %3 = vector.load %arg15[%c0, %c0_1] : memref<16x32xf32, #tpu.memory_space<vmem>>, vector<16x32xf32>
    %cst = arith.constant dense<0.000000e+00> : vector<16xf32>
    %4 = vector.multi_reduction <add>, %3, %cst [1] : vector<16x32xf32> to vector<16xf32>
    %5 = vector.shape_cast %4 : vector<16xf32> to vector<16x1xf32>
    %cst_2 = arith.constant 3.200000e+01 : f32
    %6 = vector.broadcast %cst_2 : f32 to vector<16x1xf32>
    %7 = arith.divf %5, %6 : vector<16x1xf32>
    %8 = vector.broadcast %7 : vector<16x1xf32> to vector<16x32xf32>
    %9 = arith.subf %3, %8 : vector<16x32xf32>
    %10 = arith.mulf %9, %9 : vector<16x32xf32>
    %cst_3 = arith.constant dense<0.000000e+00> : vector<16xf32>
    %11 = vector.multi_reduction <add>, %10, %cst_3 [1] : vector<16x32xf32> to vector<16xf32>
    %12 = vector.shape_cast %11 : vector<16xf32> to vector<16x1xf32>
    %cst_4 = arith.constant 3.200000e+01 : f32
    %13 = vector.broadcast %cst_4 : f32 to vector<16x1xf32>
    %14 = arith.divf %12, %13 : vector<16x1xf32>
    %15 = vector.broadcast %7 : vector<16x1xf32> to vector<16x32xf32>
    %16 = arith.subf %3, %15 : vector<16x32xf32>
    %cst_5 = arith.constant 9.99999974E-6 : f32
    %17 = vector.broadcast %cst_5 : f32 to vector<16x1xf32>
    %18 = arith.addf %14, %17 : vector<16x1xf32>
    %19 = math.rsqrt %18 : vector<16x1xf32>
    %20 = vector.broadcast %19 : vector<16x1xf32> to vector<16x32xf32>
    %21 = arith.mulf %16, %20 : vector<16x32xf32>
    %c0_6 = arith.constant 0 : index
    %c0_7 = arith.constant 0 : index
    %c0_8 = arith.constant 0 : index
    %22 = vector.load %arg5[%c0_6, %c0_7, %c0_8] : memref<1x1x64xf32, #tpu.memory_space<vmem>>, vector<1x1x64xf32>
    %23 = vector.shape_cast %22 : vector<1x1x64xf32> to vector<1x64xf32>
    %cst_9 = arith.constant 0.000000e+00 : f32
    %24 = vector.broadcast %cst_9 : f32 to vector<1x64xf32>
    %25 = arith.maximumf %23, %24 : vector<1x64xf32>
    %c0_10 = arith.constant 0 : index
    %c0_11 = arith.constant 0 : index
    %c0_12 = arith.constant 0 : index
    %26 = vector.load %arg6[%c0_10, %c0_11, %c0_12] : memref<1x1x64xf32, #tpu.memory_space<vmem>>, vector<1x1x64xf32>
    %27 = vector.shape_cast %26 : vector<1x1x64xf32> to vector<1x64xf32>
    %cst_13 = arith.constant 0.000000e+00 : f32
    %28 = vector.broadcast %cst_13 : f32 to vector<1x64xf32>
    %29 = arith.subf %28, %27 : vector<1x64xf32>
    %30 = math.exp %29 : vector<1x64xf32>
    %cst_14 = arith.constant 1.000000e+00 : f32
    %31 = vector.broadcast %cst_14 : f32 to vector<1x64xf32>
    %32 = arith.addf %31, %30 : vector<1x64xf32>
    %cst_15 = arith.constant 1.000000e+00 : f32
    %33 = vector.broadcast %cst_15 : f32 to vector<1x64xf32>
    %34 = arith.divf %33, %32 : vector<1x64xf32>
    %35 = arith.truncf %21 : vector<16x32xf32> to vector<16x32xbf16>
    %c0_16 = arith.constant 0 : index
    %c0_17 = arith.constant 0 : index
    %c0_18 = arith.constant 0 : index
    %36 = vector.load %arg7[%c0_16, %c0_17, %c0_18] : memref<1x32x64xbf16, #tpu.memory_space<vmem>>, vector<1x32x64xbf16>
    %37 = vector.shape_cast %36 : vector<1x32x64xbf16> to vector<32x64xbf16>
    %cst_19 = arith.constant dense<0.000000e+00> : vector<16x64xf32>
    %38 = tpu.matmul %35, %37, %cst_19 {dimension_numbers = #tpu.dot_dimension_numbers<[1], [0], [0], [1], [0, 0, 1, 1], [], []>} : vector<16x32xbf16>, vector<32x64xbf16>, vector<16x64xf32> -> vector<16x64xf32>
    %39 = arith.mulf %34, %34 : vector<1x64xf32>
    %40 = arith.mulf %39, %25 : vector<1x64xf32>
    %cst_20 = arith.constant 1.000000e+00 : f32
    %41 = vector.broadcast %cst_20 : f32 to vector<1x64xf32>
    %42 = arith.addf %41, %40 : vector<1x64xf32>
    %cst_21 = arith.constant 1.000000e+00 : f32
    %43 = vector.broadcast %cst_21 : f32 to vector<1x64xf32>
    %44 = arith.divf %43, %42 : vector<1x64xf32>
    %45 = arith.mulf %34, %34 : vector<1x64xf32>
    %46 = arith.mulf %45, %25 : vector<1x64xf32>
    %47 = arith.mulf %46, %44 : vector<1x64xf32>
    %cst_22 = arith.constant 1.000000e+00 : f32
    %48 = vector.broadcast %cst_22 : f32 to vector<1x64xf32>
    %49 = arith.subf %48, %47 : vector<1x64xf32>
    %cst_23 = arith.constant 0.000000e+00 : f32
    %50 = vector.broadcast %cst_23 : f32 to vector<1x64xf32>
    %51 = arith.subf %50, %34 : vector<1x64xf32>
    %52 = arith.mulf %51, %25 : vector<1x64xf32>
    %53 = arith.mulf %52, %44 : vector<1x64xf32>
    %54 = arith.mulf %34, %44 : vector<1x64xf32>
    %55 = vector.broadcast %49 : vector<1x64xf32> to vector<16x64xf32>
    %56 = arith.mulf %55, %38 : vector<16x64xf32>
    %57 = vector.broadcast %34 : vector<1x64xf32> to vector<16x64xf32>
    %58 = arith.mulf %56, %57 : vector<16x64xf32>
    %59 = vector.broadcast %54 : vector<1x64xf32> to vector<16x64xf32>
    %60 = arith.mulf %59, %38 : vector<16x64xf32>
    %61 = vector.broadcast %34 : vector<1x64xf32> to vector<16x64xf32>
    %62 = arith.mulf %60, %61 : vector<16x64xf32>
    %63 = tpu.concatenate %58, %62 in 1 : vector<16x64xf32>, vector<16x64xf32> -> vector<16x128xf32>
    %64 = tpu.concatenate %49, %44 in 1 : vector<1x64xf32>, vector<1x64xf32> -> vector<1x128xf32>
    %65 = tpu.concatenate %53, %54 in 1 : vector<1x64xf32>, vector<1x64xf32> -> vector<1x128xf32>
    %66 = tpu.iota {dimensions = array<i32: 0>} : vector<16x1xi32>
    %c1_i32 = arith.constant 1 : i32
    %67 = vector.broadcast %c1_i32 : i32 to vector<16x1xi32>
    %68 = arith.cmpi sge, %66, %67 : vector<16x1xi32>
    %c1_i32_24 = arith.constant 1 : i32
    %69 = tpu.dynamic_rotate %63 by %c1_i32_24 dim 0 : vector<16x128xf32>, i32 -> vector<16x128xf32>
    %cst_25 = arith.constant 0.000000e+00 : f32
    %70 = vector.shape_cast %68 : vector<16x1xi1> to vector<16x1xi1>
    %71 = vector.broadcast %70 : vector<16x1xi1> to vector<16x128xi1>
    %72 = vector.broadcast %cst_25 : f32 to vector<16x128xf32>
    %73 = arith.select %71, %69, %72 : vector<16x128xi1>, vector<16x128xf32>
    %c64_i32 = arith.constant 64 : i32
    %74 = tpu.dynamic_rotate %73 by %c64_i32 dim 1 : vector<16x128xf32>, i32 -> vector<16x128xf32>
    %75 = vector.broadcast %64 : vector<1x128xf32> to vector<16x128xf32>
    %76 = arith.mulf %75, %73 : vector<16x128xf32>
    %77 = arith.addf %63, %76 : vector<16x128xf32>
    %78 = vector.broadcast %65 : vector<1x128xf32> to vector<16x128xf32>
    %79 = arith.mulf %78, %74 : vector<16x128xf32>
    %80 = arith.addf %77, %79 : vector<16x128xf32>
    %c64_i32_26 = arith.constant 64 : i32
    %81 = tpu.dynamic_rotate %64 by %c64_i32_26 dim 1 : vector<1x128xf32>, i32 -> vector<1x128xf32>
    %c64_i32_27 = arith.constant 64 : i32
    %82 = tpu.dynamic_rotate %65 by %c64_i32_27 dim 1 : vector<1x128xf32>, i32 -> vector<1x128xf32>
    %83 = arith.mulf %64, %64 : vector<1x128xf32>
    %84 = arith.mulf %65, %82 : vector<1x128xf32>
    %85 = arith.addf %83, %84 : vector<1x128xf32>
    %86 = arith.addf %64, %81 : vector<1x128xf32>
    %87 = arith.mulf %65, %86 : vector<1x128xf32>
    %c2_i32 = arith.constant 2 : i32
    %88 = vector.broadcast %c2_i32 : i32 to vector<16x1xi32>
    %89 = arith.cmpi sge, %66, %88 : vector<16x1xi32>
    %c2_i32_28 = arith.constant 2 : i32
    %90 = tpu.dynamic_rotate %80 by %c2_i32_28 dim 0 : vector<16x128xf32>, i32 -> vector<16x128xf32>
    %cst_29 = arith.constant 0.000000e+00 : f32
    %91 = vector.shape_cast %89 : vector<16x1xi1> to vector<16x1xi1>
    %92 = vector.broadcast %91 : vector<16x1xi1> to vector<16x128xi1>
    %93 = vector.broadcast %cst_29 : f32 to vector<16x128xf32>
    %94 = arith.select %92, %90, %93 : vector<16x128xi1>, vector<16x128xf32>
    %c64_i32_30 = arith.constant 64 : i32
    %95 = tpu.dynamic_rotate %94 by %c64_i32_30 dim 1 : vector<16x128xf32>, i32 -> vector<16x128xf32>
    %96 = vector.broadcast %85 : vector<1x128xf32> to vector<16x128xf32>
    %97 = arith.mulf %96, %94 : vector<16x128xf32>
    %98 = arith.addf %80, %97 : vector<16x128xf32>
    %99 = vector.broadcast %87 : vector<1x128xf32> to vector<16x128xf32>
    %100 = arith.mulf %99, %95 : vector<16x128xf32>
    %101 = arith.addf %98, %100 : vector<16x128xf32>
    %c64_i32_31 = arith.constant 64 : i32
    %102 = tpu.dynamic_rotate %85 by %c64_i32_31 dim 1 : vector<1x128xf32>, i32 -> vector<1x128xf32>
    %c64_i32_32 = arith.constant 64 : i32
    %103 = tpu.dynamic_rotate %87 by %c64_i32_32 dim 1 : vector<1x128xf32>, i32 -> vector<1x128xf32>
    %104 = arith.mulf %85, %85 : vector<1x128xf32>
    %105 = arith.mulf %87, %103 : vector<1x128xf32>
    %106 = arith.addf %104, %105 : vector<1x128xf32>
    %107 = arith.addf %85, %102 : vector<1x128xf32>
    %108 = arith.mulf %87, %107 : vector<1x128xf32>
    %c4_i32 = arith.constant 4 : i32
    %109 = vector.broadcast %c4_i32 : i32 to vector<16x1xi32>
    %110 = arith.cmpi sge, %66, %109 : vector<16x1xi32>
    %c4_i32_33 = arith.constant 4 : i32
    %111 = tpu.dynamic_rotate %101 by %c4_i32_33 dim 0 : vector<16x128xf32>, i32 -> vector<16x128xf32>
    %cst_34 = arith.constant 0.000000e+00 : f32
    %112 = vector.shape_cast %110 : vector<16x1xi1> to vector<16x1xi1>
    %113 = vector.broadcast %112 : vector<16x1xi1> to vector<16x128xi1>
    %114 = vector.broadcast %cst_34 : f32 to vector<16x128xf32>
    %115 = arith.select %113, %111, %114 : vector<16x128xi1>, vector<16x128xf32>
    %c64_i32_35 = arith.constant 64 : i32
    %116 = tpu.dynamic_rotate %115 by %c64_i32_35 dim 1 : vector<16x128xf32>, i32 -> vector<16x128xf32>
    %117 = vector.broadcast %106 : vector<1x128xf32> to vector<16x128xf32>
    %118 = arith.mulf %117, %115 : vector<16x128xf32>
    %119 = arith.addf %101, %118 : vector<16x128xf32>
    %120 = vector.broadcast %108 : vector<1x128xf32> to vector<16x128xf32>
    %121 = arith.mulf %120, %116 : vector<16x128xf32>
    %122 = arith.addf %119, %121 : vector<16x128xf32>
    %c64_i32_36 = arith.constant 64 : i32
    %123 = tpu.dynamic_rotate %106 by %c64_i32_36 dim 1 : vector<1x128xf32>, i32 -> vector<1x128xf32>
    %c64_i32_37 = arith.constant 64 : i32
    %124 = tpu.dynamic_rotate %108 by %c64_i32_37 dim 1 : vector<1x128xf32>, i32 -> vector<1x128xf32>
    %125 = arith.mulf %106, %106 : vector<1x128xf32>
    %126 = arith.mulf %108, %124 : vector<1x128xf32>
    %127 = arith.addf %125, %126 : vector<1x128xf32>
    %128 = arith.addf %106, %123 : vector<1x128xf32>
    %129 = arith.mulf %108, %128 : vector<1x128xf32>
    %c8_i32 = arith.constant 8 : i32
    %130 = vector.broadcast %c8_i32 : i32 to vector<16x1xi32>
    %131 = arith.cmpi sge, %66, %130 : vector<16x1xi32>
    %c8_i32_38 = arith.constant 8 : i32
    %132 = tpu.dynamic_rotate %122 by %c8_i32_38 dim 0 : vector<16x128xf32>, i32 -> vector<16x128xf32>
    %cst_39 = arith.constant 0.000000e+00 : f32
    %133 = vector.shape_cast %131 : vector<16x1xi1> to vector<16x1xi1>
    %134 = vector.broadcast %133 : vector<16x1xi1> to vector<16x128xi1>
    %135 = vector.broadcast %cst_39 : f32 to vector<16x128xf32>
    %136 = arith.select %134, %132, %135 : vector<16x128xi1>, vector<16x128xf32>
    %c64_i32_40 = arith.constant 64 : i32
    %137 = tpu.dynamic_rotate %136 by %c64_i32_40 dim 1 : vector<16x128xf32>, i32 -> vector<16x128xf32>
    %138 = vector.broadcast %127 : vector<1x128xf32> to vector<16x128xf32>
    %139 = arith.mulf %138, %136 : vector<16x128xf32>
    %140 = arith.addf %122, %139 : vector<16x128xf32>
    %141 = vector.broadcast %129 : vector<1x128xf32> to vector<16x128xf32>
    %142 = arith.mulf %141, %137 : vector<16x128xf32>
    %143 = arith.addf %140, %142 : vector<16x128xf32>
    %144 = vector.extract_strided_slice %143 {offsets = [0, 64], sizes = [16, 64], strides = [1, 1]} : vector<16x128xf32> to vector<16x64xf32>
    %145 = arith.truncf %144 : vector<16x64xf32> to vector<16x64xbf16>
    %c0_41 = arith.constant 0 : index
    %c0_42 = arith.constant 0 : index
    %c0_43 = arith.constant 0 : index
    %146 = vector.load %arg8[%c0_41, %c0_42, %c0_43] : memref<1x64x32xbf16, #tpu.memory_space<vmem>>, vector<1x64x32xbf16>
    %147 = vector.shape_cast %146 : vector<1x64x32xbf16> to vector<64x32xbf16>
    %cst_44 = arith.constant dense<0.000000e+00> : vector<16x32xf32>
    %148 = tpu.matmul %145, %147, %cst_44 {dimension_numbers = #tpu.dot_dimension_numbers<[1], [0], [0], [1], [0, 0, 1, 1], [], []>} : vector<16x64xbf16>, vector<64x32xbf16>, vector<16x32xf32> -> vector<16x32xf32>
    %c0_45 = arith.constant 0 : index
    %c0_46 = arith.constant 0 : index
    %c0_47 = arith.constant 0 : index
    %149 = vector.load %arg9[%c0_45, %c0_46, %c0_47] : memref<1x1x32xf32, #tpu.memory_space<vmem>>, vector<1x1x32xf32>
    %150 = vector.shape_cast %149 : vector<1x1x32xf32> to vector<1x32xf32>
    %151 = vector.broadcast %150 : vector<1x32xf32> to vector<16x32xf32>
    %152 = arith.mulf %21, %151 : vector<16x32xf32>
    %153 = arith.addf %148, %152 : vector<16x32xf32>
    %cst_48 = arith.constant 5.000000e-01 : f32
    %154 = vector.broadcast %cst_48 : f32 to vector<16x32xf32>
    %155 = arith.mulf %154, %153 : vector<16x32xf32>
    %cst_49 = arith.constant 0.707106769 : f32
    %156 = vector.broadcast %cst_49 : f32 to vector<16x32xf32>
    %157 = arith.mulf %153, %156 : vector<16x32xf32>
    %cst_50 = arith.constant 0.000000e+00 : f32
    %158 = vector.broadcast %cst_50 : f32 to vector<16x32xf32>
    %159 = arith.cmpf oge, %157, %158 : vector<16x32xf32>
    %cst_51 = arith.constant 1.000000e+00 : f32
    %cst_52 = arith.constant -1.000000e+00 : f32
    %160 = vector.broadcast %cst_51 : f32 to vector<16x32xf32>
    %161 = vector.broadcast %cst_52 : f32 to vector<16x32xf32>
    %162 = arith.select %159, %160, %161 : vector<16x32xi1>, vector<16x32xf32>
    %163 = math.absf %157 : vector<16x32xf32>
    %cst_53 = arith.constant 0.327591091 : f32
    %164 = vector.broadcast %cst_53 : f32 to vector<16x32xf32>
    %165 = arith.mulf %164, %163 : vector<16x32xf32>
    %cst_54 = arith.constant 1.000000e+00 : f32
    %166 = vector.broadcast %cst_54 : f32 to vector<16x32xf32>
    %167 = arith.addf %166, %165 : vector<16x32xf32>
    %cst_55 = arith.constant 1.000000e+00 : f32
    %168 = vector.broadcast %cst_55 : f32 to vector<16x32xf32>
    %169 = arith.divf %168, %167 : vector<16x32xf32>
    %cst_56 = arith.constant 1.06140542 : f32
    %170 = vector.broadcast %cst_56 : f32 to vector<16x32xf32>
    %171 = arith.mulf %170, %169 : vector<16x32xf32>
    %cst_57 = arith.constant -1.45315206 : f32
    %172 = vector.broadcast %cst_57 : f32 to vector<16x32xf32>
    %173 = arith.addf %171, %172 : vector<16x32xf32>
    %174 = arith.mulf %173, %169 : vector<16x32xf32>
    %cst_58 = arith.constant 1.42141378 : f32
    %175 = vector.broadcast %cst_58 : f32 to vector<16x32xf32>
    %176 = arith.addf %174, %175 : vector<16x32xf32>
    %177 = arith.mulf %176, %169 : vector<16x32xf32>
    %cst_59 = arith.constant -0.284496725 : f32
    %178 = vector.broadcast %cst_59 : f32 to vector<16x32xf32>
    %179 = arith.addf %177, %178 : vector<16x32xf32>
    %180 = arith.mulf %179, %169 : vector<16x32xf32>
    %cst_60 = arith.constant 0.254829586 : f32
    %181 = vector.broadcast %cst_60 : f32 to vector<16x32xf32>
    %182 = arith.addf %180, %181 : vector<16x32xf32>
    %183 = arith.mulf %182, %169 : vector<16x32xf32>
    %cst_61 = arith.constant 0.000000e+00 : f32
    %184 = vector.broadcast %cst_61 : f32 to vector<16x32xf32>
    %185 = arith.subf %184, %163 : vector<16x32xf32>
    %186 = arith.mulf %185, %163 : vector<16x32xf32>
    %187 = math.exp %186 : vector<16x32xf32>
    %188 = arith.mulf %183, %187 : vector<16x32xf32>
    %cst_62 = arith.constant 1.000000e+00 : f32
    %189 = vector.broadcast %cst_62 : f32 to vector<16x32xf32>
    %190 = arith.subf %189, %188 : vector<16x32xf32>
    %191 = arith.mulf %162, %190 : vector<16x32xf32>
    %cst_63 = arith.constant 1.000000e+00 : f32
    %192 = vector.broadcast %cst_63 : f32 to vector<16x32xf32>
    %193 = arith.addf %192, %191 : vector<16x32xf32>
    %194 = arith.mulf %155, %193 : vector<16x32xf32>
    %195 = arith.truncf %194 : vector<16x32xf32> to vector<16x32xbf16>
    %c0_64 = arith.constant 0 : index
    %c0_65 = arith.constant 0 : index
    %c0_66 = arith.constant 0 : index
    %196 = vector.load %arg10[%c0_64, %c0_65, %c0_66] : memref<1x32x64xbf16, #tpu.memory_space<vmem>>, vector<1x32x64xbf16>
    %197 = vector.shape_cast %196 : vector<1x32x64xbf16> to vector<32x64xbf16>
    %cst_67 = arith.constant dense<0.000000e+00> : vector<16x64xf32>
    %198 = tpu.matmul %195, %197, %cst_67 {dimension_numbers = #tpu.dot_dimension_numbers<[1], [0], [0], [1], [0, 0, 1, 1], [], []>} : vector<16x32xbf16>, vector<32x64xbf16>, vector<16x64xf32> -> vector<16x64xf32>
    %c0_68 = arith.constant 0 : index
    %c0_69 = arith.constant 0 : index
    %c0_70 = arith.constant 0 : index
    %199 = vector.load %arg11[%c0_68, %c0_69, %c0_70] : memref<1x1x64xf32, #tpu.memory_space<vmem>>, vector<1x1x64xf32>
    %200 = vector.shape_cast %199 : vector<1x1x64xf32> to vector<1x64xf32>
    %201 = vector.broadcast %200 : vector<1x64xf32> to vector<16x64xf32>
    %202 = arith.addf %198, %201 : vector<16x64xf32>
    %203 = vector.extract_strided_slice %202 {offsets = [0, 0], sizes = [16, 32], strides = [1, 1]} : vector<16x64xf32> to vector<16x32xf32>
    %204 = vector.extract_strided_slice %202 {offsets = [0, 32], sizes = [16, 32], strides = [1, 1]} : vector<16x64xf32> to vector<16x32xf32>
    %cst_71 = arith.constant 0.000000e+00 : f32
    %205 = vector.broadcast %cst_71 : f32 to vector<16x32xf32>
    %206 = arith.subf %205, %204 : vector<16x32xf32>
    %207 = math.exp %206 : vector<16x32xf32>
    %cst_72 = arith.constant 1.000000e+00 : f32
    %208 = vector.broadcast %cst_72 : f32 to vector<16x32xf32>
    %209 = arith.addf %208, %207 : vector<16x32xf32>
    %210 = tpu.reciprocal %209 {approx = true} : vector<16x32xf32> -> vector<16x32xf32>
    %211 = arith.mulf %203, %210 : vector<16x32xf32>
    %212 = arith.addf %3, %211 : vector<16x32xf32>
    %c0_73 = arith.constant 0 : index
    %c0_74 = arith.constant 0 : index
    %213 = vector.load %arg15[%c0_73, %c0_74] : memref<16x32xf32, #tpu.memory_space<vmem>>, vector<16x32xf32>
    tpu.vector_store %arg15[%c0_73, %c0_74], %212 {strides = array<i32>} : memref<16x32xf32, #tpu.memory_space<vmem>>, vector<16x32xf32>,
    %c1_i32_75 = arith.constant 1 : i32
    %214 = arith.cmpi eq, %arg1, %c1_i32_75 : i32
    %215 = arith.extui %214 : i1 to i32
    %c0_i32_76 = arith.constant 0 : i32
    %216 = arith.cmpi ne, %215, %c0_i32_76 : i32
    scf.if %216 {
      %cst_77 = arith.constant dense<0.000000e+00> : vector<32xf32>
      %217 = vector.multi_reduction <add>, %212, %cst_77 [0] : vector<16x32xf32> to vector<32xf32>
      %218 = vector.shape_cast %217 : vector<32xf32> to vector<1x32xf32>
      %cst_78 = arith.constant 1.600000e+01 : f32
      %219 = vector.broadcast %cst_78 : f32 to vector<1x32xf32>
      %220 = arith.divf %218, %219 : vector<1x32xf32>
      %221 = arith.truncf %220 : vector<1x32xf32> to vector<1x32xbf16>
      %c0_79 = arith.constant 0 : index
      %c0_80 = arith.constant 0 : index
      %222 = vector.load %arg12[%c0_79, %c0_80] : memref<32x8xbf16, #tpu.memory_space<vmem>>, vector<32x8xbf16>
      %cst_81 = arith.constant dense<0.000000e+00> : vector<1x8xf32>
      %223 = tpu.matmul %221, %222, %cst_81 {dimension_numbers = #tpu.dot_dimension_numbers<[1], [0], [0], [1], [0, 0, 1, 1], [], []>} : vector<1x32xbf16>, vector<32x8xbf16>, vector<1x8xf32> -> vector<1x8xf32>
      %c0_82 = arith.constant 0 : index
      %c0_83 = arith.constant 0 : index
      %224 = vector.load %arg13[%c0_82, %c0_83] : memref<1x8xf32, #tpu.memory_space<vmem>>, vector<1x8xf32>
      %225 = arith.addf %223, %224 : vector<1x8xf32>
      %cst_84 = arith.constant dense<0xFF800000> : vector<1xf32>
      %226 = vector.multi_reduction <maximumf>, %225, %cst_84 [1] : vector<1x8xf32> to vector<1xf32>
      %227 = vector.shape_cast %226 : vector<1xf32> to vector<1x1xf32>
      %228 = vector.broadcast %227 : vector<1x1xf32> to vector<1x8xf32>
      %229 = arith.subf %225, %228 : vector<1x8xf32>
      %230 = math.exp %229 : vector<1x8xf32>
      %cst_85 = arith.constant dense<0.000000e+00> : vector<1xf32>
      %231 = vector.multi_reduction <add>, %230, %cst_85 [1] : vector<1x8xf32> to vector<1xf32>
      %232 = vector.shape_cast %231 : vector<1xf32> to vector<1x1xf32>
      %233 = vector.broadcast %232 : vector<1x1xf32> to vector<1x8xf32>
      %234 = arith.divf %230, %233 : vector<1x8xf32>
      %c0_86 = arith.constant 0 : index
      %c0_87 = arith.constant 0 : index
      %c0_88 = arith.constant 0 : index
      %235 = vector.load %arg14[%c0_86, %c0_87, %c0_88] : memref<1x1x8xf32, #tpu.memory_space<vmem>>, vector<1x1x8xf32>
      %236 = vector.shape_cast %235 : vector<1x1x8xf32> to vector<1x8xf32>
      %237 = vector.shape_cast %234 : vector<1x8xf32> to vector<1x1x8xf32>
      tpu.vector_store %arg14[%c0_86, %c0_87, %c0_88], %237 {strides = array<i32>} : memref<1x1x8xf32, #tpu.memory_space<vmem>>, vector<1x1x8xf32>,
    } else {
    }
    return
  }
  func.func @transform_0(%arg0: i32, %arg1: i32) -> (i32, i32, i32) {
    %c0_i32 = arith.constant 0 : i32
    %c0_i32_0 = arith.constant 0 : i32
    %c0_i32_1 = arith.constant 0 : i32
    return %arg0, %c0_i32, %c0_i32_0 : i32, i32, i32
  }
  func.func @transform_1(%arg0: i32, %arg1: i32) -> (i32, i32) {
    %c0_i32 = arith.constant 0 : i32
    %c0_i32_0 = arith.constant 0 : i32
    %c0_i32_1 = arith.constant 0 : i32
    return %c0_i32, %c0_i32_0 : i32, i32
  }
  func.func @transform_2(%arg0: i32, %arg1: i32) -> (i32, i32) {
    %c0_i32 = arith.constant 0 : i32
    %c0_i32_0 = arith.constant 0 : i32
    %c0_i32_1 = arith.constant 0 : i32
    return %c0_i32, %c0_i32_0 : i32, i32
  }
  func.func @transform_3(%arg0: i32, %arg1: i32) -> (i32, i32, i32) {
    %c0_i32 = arith.constant 0 : i32
    %c0_i32_0 = arith.constant 0 : i32
    %c0_i32_1 = arith.constant 0 : i32
    return %arg1, %c0_i32, %c0_i32_0 : i32, i32, i32
  }
  func.func @transform_4(%arg0: i32, %arg1: i32) -> (i32, i32, i32) {
    %c0_i32 = arith.constant 0 : i32
    %c0_i32_0 = arith.constant 0 : i32
    %c0_i32_1 = arith.constant 0 : i32
    return %arg1, %c0_i32, %c0_i32_0 : i32, i32, i32
  }
  func.func @transform_5(%arg0: i32, %arg1: i32) -> (i32, i32, i32) {
    %c0_i32 = arith.constant 0 : i32
    %c0_i32_0 = arith.constant 0 : i32
    %c0_i32_1 = arith.constant 0 : i32
    return %arg1, %c0_i32, %c0_i32_0 : i32, i32, i32
  }
  func.func @transform_6(%arg0: i32, %arg1: i32) -> (i32, i32, i32) {
    %c0_i32 = arith.constant 0 : i32
    %c0_i32_0 = arith.constant 0 : i32
    %c0_i32_1 = arith.constant 0 : i32
    return %arg1, %c0_i32, %c0_i32_0 : i32, i32, i32
  }
  func.func @transform_7(%arg0: i32, %arg1: i32) -> (i32, i32, i32) {
    %c0_i32 = arith.constant 0 : i32
    %c0_i32_0 = arith.constant 0 : i32
    %c0_i32_1 = arith.constant 0 : i32
    return %arg1, %c0_i32, %c0_i32_0 : i32, i32, i32
  }
  func.func @transform_8(%arg0: i32, %arg1: i32) -> (i32, i32, i32) {
    %c0_i32 = arith.constant 0 : i32
    %c0_i32_0 = arith.constant 0 : i32
    %c0_i32_1 = arith.constant 0 : i32
    return %arg1, %c0_i32, %c0_i32_0 : i32, i32, i32
  }
  func.func @transform_9(%arg0: i32, %arg1: i32) -> (i32, i32, i32) {
    %c0_i32 = arith.constant 0 : i32
    %c0_i32_0 = arith.constant 0 : i32
    %c0_i32_1 = arith.constant 0 : i32
    return %arg1, %c0_i32, %c0_i32_0 : i32, i32, i32
  }
  func.func @transform_10(%arg0: i32, %arg1: i32) -> (i32, i32) {
    %c0_i32 = arith.constant 0 : i32
    %c0_i32_0 = arith.constant 0 : i32
    %c0_i32_1 = arith.constant 0 : i32
    return %c0_i32, %c0_i32_0 : i32, i32
  }
  func.func @transform_11(%arg0: i32, %arg1: i32) -> (i32, i32) {
    %c0_i32 = arith.constant 0 : i32
    %c0_i32_0 = arith.constant 0 : i32
    %c0_i32_1 = arith.constant 0 : i32
    return %c0_i32, %c0_i32_0 : i32, i32
  }
  func.func @transform_12(%arg0: i32, %arg1: i32) -> (i32, i32, i32) {
    %c0_i32 = arith.constant 0 : i32
    %c0_i32_0 = arith.constant 0 : i32
    %c0_i32_1 = arith.constant 0 : i32
    return %arg0, %c0_i32, %c0_i32_0 : i32, i32, i32
  }
}

</mosaic_0001>

<bundles_post_ra>
// kernel: linoss_forward_pallas.1
= control target key start
LH: loop header
LB: loop body
LE: loop exit
PB: predicated region body
PF: predicated region fallthrough
CT: control target
= control target key end

     0   :  { %s2090_s0 = inlined_call_operand.vmem [shape: f32[4,16,8], index: 0, kind: input, shape index: {}]   ;;  %s2091_s1 = inlined_call_operand.vmem [shape: bf16[8,32], index: 1, kind: input, shape index: {}]   ;;  %s2092_s2 = inlined_call_operand.vmem [shape: f32[1,32], index: 2, kind: input, shape index: {}]   ;;  %s2093_s3 = inlined_call_operand.vmem [shape: f32[2,1,64], index: 3, kind: input, shape index: {}]   ;;  %s2094_s4 = inlined_call_operand.vmem [shape: f32[2,1,64], index: 4, kind: input, shape index: {}]   ;;  %s2095_s5 = inlined_call_operand.vmem [shape: bf16[2,32,64], index: 5, kind: input, shape index: {}]   ;;  %s2096_s6 = inlined_call_operand.vmem [shape: bf16[2,64,32], index: 6, kind: input, shape index: {}]   ;;  %s2097_s7 = inlined_call_operand.vmem [shape: f32[2,1,32], index: 7, kind: input, shape index: {}]   ;;  %s2098_s8 = inlined_call_operand.vmem [shape: bf16[2,32,64], index: 8, kind: input, shape index: {}]   ;;  %s2099_s9 = inlined_call_operand.vmem [shape: f32[2,1,64], index: 9, kind: input, shape index: {}]   ;;  %s2100_s10 = inlined_call_operand.vmem [shape: bf16[32,8], index: 10, kind: input, shape index: {}]   ;;  %s2101_s11 = inlined_call_operand.vmem [shape: f32[1,8], index: 11, kind: input, shape index: {}]   ;;  %s2102_s12 = inlined_call_operand.hbm [shape: f32[4,1,8], index: 12, kind: output, shape index: {}]  }
   0x1   :  { %2115 = sst [smem:[#allocation17_spill]] %s2090_s0 }
   0x2   :  { %2116 = sst [smem:[#allocation18_spill]] %s2101_s11 }
   0x3   :  { %2117 = sst [smem:[#allocation19_spill]] %s2102_s12 }
   0x4   :  { %17 = vsyncpa [#allocation4], 0 }
   0x5   :  { %19 = vsyncpa [#allocation4 + $0x1], 0  ;;  %s1787_s21 = smov 0   ;;  %s1789_s22 = smov 0  }
   0x6   :  { %s1791_s23 = smov 0   ;;  %s1793_s24 = smov 0  }
   0x7   :  { %s1795_s25 = smov 0   ;;  %s1797_s26 = smov 0  }
   0x8   :  { %s1799_s27 = smov 0   ;;  %s1801_s28 = smov 0  }
   0x9 LB: > { %2118 = sst [smem:[#allocation6_spill]] %s1682_s21  ;;  %s1400_s29 = sadd.s32 4294967295, %s1710_s28   ;;  %s1710_s28 = sphi %s1801_s28, %s25_s28   ;;  %s1706_s27 = sphi %s1799_s27, %s2148_s27   ;;  %s1702_s26 = sphi %s1797_s26, %s2147_s26   ;;  %s1698_s25 = sphi %s1795_s25, %s2146_s25   ;;  %s1694_s24 = sphi %s1793_s24, %s2145_s24   ;;  %s1690_s23 = sphi %s1791_s23, %s2151_s23   ;;  %s1686_s22 = sphi %s1789_s22, %s2150_s22   ;;  %s1682_s21 = sphi %s1787_s21, %s2149_s21  }
   0xa   : > { %2119 = sst [smem:[#allocation7_spill]] %s1690_s23  ;;  %s1401_s30 = sadd.s32 4294967294, %s1710_s28  }
   0xb   : > { %2120 = sst [smem:[#allocation8_spill]] %s1698_s25  ;;  %s34_s13 = sadd.s32 1, %s1702_s26 }
   0xc   : > { %2121 = sst [smem:[#allocation9_spill]] %s1702_s26  ;;  %p35_p0 = scmp.ge.s32.totalorder %s34_s13, 2 }
   0xd   : > { %2122 = sst [smem:[#allocation10_spill]] %s1706_s27  ;;  %s37_s14 = sadd.s32 1, %s1706_s27 }
   0xe   : > { %2123 = sst [smem:[#allocation11_spill]] %s1710_s28  ;;  %p346_p1 = scmp.ne.s32.totalorder %s1690_s23, %s1686_s22 }
   0xf   : > { %p347_p2 = scmp.eq.s32.totalorder %s1400_s29, 7  ;;  %s2153_s13 = smov (%p35_p0, %s34_s13), 0 }
  0x10   : > { %2124 = sst [smem:[#allocation12_spill]] %s2153_s13  ;;  %s2155_s14 = smov (!%p35_p0, %s37_s14), %s1706_s27 }
  0x11   : > { %p1836_p3 = por %p347_p2, %p346_p1  ;;  %p352_p4 = scmp.ne.s32.totalorder %s1686_s22, %s1682_s21 }
  0x12   : > { %p39_p5 = scmp.ge.s32.totalorder %s2155_s14, 4  ;;  %p353_p6 = scmp.eq.s32.totalorder %s1401_s30, 7 }
  0x13   : > { %s2125_s15 = scalar_select %p1836_p3, 1, 0 }
  0x14   : > { %p1404_p7 = scmp.ge.s32.totalorder %s1710_s28, 1  ;;  %p439_p8 = scmp.lt.s32.totalorder %s1710_s28, 9 }
  0x15   : > { %2126 = sst [smem:[#allocation13_spill]] %s2125_s15  ;;  %s2157_s14 = smov (%p39_p5, %s2155_s14), 0 }
  0x16   : > { %2127 = sst [smem:[#allocation14_spill]] %s2157_s14  ;;  %p1846_p9 = por %p353_p6, %p352_p4 }
  0x17   : > { %p440_p10 = pnand %p1404_p7, %p439_p8  ;;  %s333_s17 = ssub.s32 %s1706_s27, %s2157_s14 }
  0x18   : > { %s2128_s16 = scalar_select %p1846_p9, 1, 0 }
  0x19   : > { %s336_s18 = sadd.s32 1, %s1690_s23  ;;  %p334_p11 = scmp.eq.s32.totalorder %s333_s17, 0 }
  0x1a   : > { %2129 = sst [smem:[#allocation15_spill]] %s2128_s16  ;;  %443 = sbr.rel (%p440_p10) target bundleno = 2640 (0xa50), region = 68 }
  0x1b   : > { %s1854_s19 = scalar_select %p334_p11, %s1690_s23, %s336_s18  }
  0x1c   : > { %p507_p12 = scmp.lt.s32.totalorder (!%p440_p10), %s1698_s25, 3  ;;  %p512_p13 = scmp.lt.s32.totalorder (!%p440_p10), %s1694_s24, 1 }
  0x1d   : > { %2130 = sst [smem:[#allocation16_spill]] %s1854_s19  ;;  %s2132_s28 = sand.u32 (!%p440_p10), 1, %s1686_s22  }
  0x1e   : > { %s2131_s0 = sld [smem:[#allocation17_spill]] (!%p440_p10)  ;;  %p1413_p0 = scmp.ne.s32.totalorder (!%p440_p10), %s1694_s24, 0 }
  0x1f   : > { %s508_s29 = scalar_select %p507_p12, %s1698_s25, 3 }
  0x20   : > { %s1861_s30 = scalar_select %p512_p13, %s1694_s24, 1 }
  0x21   : > { %s1436_s17 = sshll.u32 %s508_s29, 4 }
  0x22   : > { %s1437_s21 = sshll.u32 %s1861_s30, 4  ;;  %s1438_s25 = sshll.u32 %s1861_s30, 5 }
  0x23   : > { %s1878_s15 = scalar_lea.vmem %s2095_s5, %s1437_s21  ;;  %s1884_s14 = scalar_lea.vmem %s2096_s6, %s1438_s25 }
  0x24   : > { %s511_s13 = scalar_lea.vmem %s2131_s0, %s1436_s17  ;;  %s530_s26 = scalar_lea.vmem %s2097_s7, %s1861_s30 }
  0x25   : > { %s1893_s23 = scalar_lea.vmem %s2098_s8, %s1437_s21  ;;  %s538_s12 = scalar_lea.vmem %s2099_s9, %s1861_s30 }
  0x26   : > { %s1901_s0 = scalar_lea.vmem [#allocation3], %s2132_s28  ;;  %543 = sbr.rel (%p1413_p0) target bundleno = 248 (0xf8), region = 72 }
  0x2b   : > { %v547_v0 = vld [vmem:[%s2091_s1] sm:$0xf]  ;;  %vm559_vm0 = vcmask 1043456   ;;  %v1712_v2 = vmov 0.0   ;;  %vm1713_vm1 = vmmov 0   ;;  %v545_v4 = vld [vmem:[%s511_s13 + $0x8] sm:$0xff] }
  0x2c   : > { %v544_v1 = vld [vmem:[%s511_s13] sm:$0xff]  ;;  %1456 = vmatprep.subr.bf16.mxu0 %v1712_v2  ;;  %v561_v3 = vsel %vm559_vm0, %v547_v0, 0  ;;  %1458 = vmatprep.mubr.msk.bf16.mxu0 %vm1713_vm1, %v1712_v2  ;;  %vm555_vm2 = vcmask 64512   ;;  %vm604_vm3 = vcmask 261120  }
  0x2d   : > { %1457 = vmatpush3.bf16.msra.mxu0 %v561_v3  ;;  %v546_v5 = vpack.c.bf16 %v545_v4, %v544_v1  ;;  %v1414_v6 = vld [vmem:[%s2092_s2] ss:$0 sm:$0xff] }
  0x30   : > { %1459 = vmatmul.mubr.msk.bf16.vlgmr.msra.gmra.mxu0 %vm555_vm2, %v546_v5 }
  0xf0   : > { %v597_v7 = vpop.f32.mrf.mxu0 }
  0xf1   : > { %v598_v8 = vadd.f32 %v1414_v6, %v597_v7 }
  0xf2   : > { %v1460_v9 = vpop.f32.mrf.mxu0 }
  0xf3   : > { %605 = vst.msk [vmem:[#allocation2] sm:$0xff] %vm604_vm3, %v598_v8 }
  0xf4   : > { %v600_v10 = vpop.f32.mrf.mxu0 }
  0xf5   : > { %v601_v11 = vadd.f32 %v1414_v6, %v600_v10 }
  0xf6   : > { %v1461_v12 = vpop.f32.mrf.mxu0 }
  0xf7   : > { %606 = vst.msk [vmem:[#allocation2 + $0x8] sm:$0xff] %vm604_vm3, %v601_v11 }
  0xf8 PF: > { %vm609_vm4 = vcmask 261120   ;;  %v1578_v27 = vld [vmem:[%s1878_s15 + $0x8] sm:$0xff]   ;;  %v1714_v28 = vmov 0.0   ;;  %vm1715_vm5 = vmmov 0   ;;  %v1579_v29 = vld [vmem:[%s1878_s15] sm:$0xff]   ;;  %s2133_s20 = scalar_lea.vmem %s2094_s4, %s1861_s30  ;;  %s2134_s18 = scalar_lea.vmem %s2093_s3, %s1861_s30  ;;  %v719_v52 = vlaneseq }
  0xf9   : > { %1462 = vmatprep.subr.bf16.mxu0 %v1714_v28  ;;  %1466 = vmatprep.mubr.msk.bf16.mxu0 %vm1715_vm5, %v1714_v28  ;;  %v639_v41 = vld [vmem:[%s2133_s20] sm:$0x1]  ;;  %s1716_s27 = smov 64   ;;  %vm752_vm6 = vcmask 523264   ;;  %s1718_s30 = smov 96  }
  0xfa   : > { %v1910_v13 = vld [vmem:[#allocation2] sm:$0xff]  ;;  %1463 = vmatpush3.bf16.msra.mxu0 %v1578_v27  ;;  %1470 = vmatprep.subr.bf16.mxu1 %v1714_v28  ;;  %v640_v42 = vsub.f32 0.0, %v639_v41  ;;  %v1951_v55 = vshrl.u32 %v719_v52, 7  ;;  %p1429_p1 = scmp.ne.s32.totalorder %s1694_s24, 1 }
  0xfb   : > { %v610_v15 = vsel %vm609_vm4, %v1910_v13, 0.0  ;;  %1464 = vmatprep.subr.bf16.mxu0 %v1714_v28  ;;  %1478 = vmatprep.mubr.msk.bf16.mxu1 %vm1715_vm5, %v1714_v28  ;;  %v637_v47 = vld [vmem:[%s2134_s18] sm:$0x1]  ;;  %s2135_s16 = sld [smem:[#allocation18_spill]] (!%p1429_p1) }
  0xfc   : > { %611 = vadd.xlane.f32.xlu0 %v610_v15  ;;  %v641_v43 = vmul.f32 1.442695, %v640_v42  ;;  %v638_v48 = vmax.f32 %v637_v47, 0.0  ;;  %v1954_v58 = vsub.s32 0, %v1951_v55  ;;  %vm775_vm7 = vcmp.lt.s32.totalorder %v1951_v55, 1 }
  0xfd   : > { %vm771_vm8 = vcmp.ge.s32.totalorder %v1951_v55, 1  ;;  %vm817_vm9 = vcmp.lt.s32.totalorder %v1951_v55, 2  ;;  %vm813_vm10 = vcmp.ge.s32.totalorder %v1951_v55, 2  ;;  %vm859_vm11 = vcmp.lt.s32.totalorder %v1951_v55, 4 }
  0xfe   : > { %v1912_v14 = vld [vmem:[#allocation2 + $0x8] sm:$0xff]  ;;  %1465 = vmatpush3.bf16.msra.mxu0 %v1579_v29  ;;  %vm855_vm12 = vcmp.ge.s32.totalorder %v1951_v55, 4  ;;  %v1580_v55 = vld [vmem:[%s1884_s14 + $0x18] sm:$0xff]  }
  0xff   : > { %v613_v16 = vsel %vm609_vm4, %v1912_v14, 0.0  ;;  %1482 = vmatprep.subr.bf16.mxu0 %v1714_v28  ;;  %1471 = vmatpush3.bf16.msra.mxu1 %v1580_v55 }
 0x100   : > { %614 = vadd.xlane.f32.xlu0 %v613_v16  ;;  %1472 = vmatprep.subr.bf16.mxu1 %v1714_v28 }
 0x185   : > { %v612_v17 = vpop.xlane.xlu0 %611 }
 0x186   : > { %v617_v18 = vmul.f32 0.03125, %v612_v17 }
 0x188   : > { %v619_v19 = vsub.f32 %v1910_v13, %v617_v18 }
 0x189   : > { %v615_v20 = vpop.xlane.xlu0 %614 }
 0x18a   : > { %v618_v21 = vmul.f32 0.03125, %v615_v20  ;;  %v621_v22 = vmul.f32 %v619_v19, %v619_v19 }
 0x18c   : > { %v620_v23 = vsub.f32 %v1912_v14, %v618_v21  ;;  %v623_v24 = vsel %vm609_vm4, %v621_v22, 0.0 }
 0x18d   : > { %624 = vadd.xlane.f32.xlu1 %v623_v24 }
 0x18e   : > { %v622_v25 = vmul.f32 %v620_v23, %v620_v23 }
 0x190   : > { %v626_v26 = vsel %vm609_vm4, %v622_v25, 0.0 }
 0x191   : > { %627 = vadd.xlane.f32.xlu1 %v626_v26 }
 0x216   : > { %v625_v30 = vpop.xlane.xlu1 %624 }
 0x217   : > { %v629_v31 = vmul.f32 0.03125, %v625_v30 }
 0x219   : > { %v631_v32 = vadd.f32 1e-05, %v629_v31 }
 0x21a   : > { %v628_v33 = vpop.xlane.xlu1 %627 }
 0x21b   : > { %v630_v34 = vmul.f32 0.03125, %v628_v33  ;;  %1586 = vrsqrt.f32 %v631_v32 }
 0x21d   : > { %v632_v35 = vadd.f32 1e-05, %v630_v34 }
 0x21f   : > { %1588 = vrsqrt.f32 %v632_v35 }
 0x220   : > { %1590 = vpow2.f32 %v641_v43 }
 0x228   : > { %v1587_v36 = vpop.eup %1586 }
 0x229   : > { %v1932_v38 = vmul.f32 %v1587_v36, %v619_v19 }
 0x22c   : > { %v1589_v37 = vpop.eup %1588 }
 0x22d   : > { %v1934_v39 = vmul.f32 %v1589_v37, %v620_v23  ;;  %v1591_v44 = vpop.eup %1590 }
 0x22e   : > { %v643_v45 = vadd.f32 1.0, %v1591_v44 }
 0x22f   : > { %v646_v40 = vpack.c.bf16 %v1934_v39, %v1932_v38 }
 0x230   : > { %1592 = vrcp.f32 %v643_v45 }
 0x231   : > { %1467 = vmatmul.mubr.msk.bf16.vlgmr.msra.gmra.mxu0 %vm609_vm4, %v646_v40 }
 0x232   : > { %1486 = vmatprep.mubr.msk.bf16.mxu0 %vm1715_vm5, %v1714_v28 }
 0x23d   : > { %v1593_v46 = vpop.eup %1592 }
 0x23e   : > { %v707_v49 = vmul.f32 %v1593_v46, %v1593_v46  ;;  %v730_v61 = vrot.slane %v1593_v46, %v1954_v58  ;;  %v714_v12 = vsub.f32 0.0, %v1593_v46 }
 0x240   : > { %v708_v50 = vmul.f32 %v707_v49, %v638_v48  ;;  %v715_v18 = vmul.f32 %v714_v12, %v638_v48 }
 0x242   : > { %v709_v51 = vadd.f32 1.0, %v708_v50 }
 0x244   : > { %1594 = vrcp.f32 %v709_v51 }
 0x251   : > { %v1595_v53 = vpop.eup %1594 }
 0x252   : > { %v712_v54 = vmul.f32 %v1595_v53, %v708_v50  ;;  %v717_v57 = vmul.f32 %v1595_v53, %v1593_v46  ;;  %v759_v10 = vrot.slane %v1595_v53, %v1954_v58  ;;  %v716_v26 = vmul.f32 %v1595_v53, %v715_v18 }
 0x254   : > { %v713_v56 = vsub.f32 1.0, %v712_v54  ;;  %v738_v60 = vrot.slane %v717_v57, %v1954_v58 }
 0x256   : > { %v722_v59 = vrot.slane %v713_v56, %v1954_v58 }
 0x2f1   : > { %v700_v62 = vpop.f32.mrf.mxu0 }
 0x2f2   : > { %v724_v63 = vmul.f32 %v722_v59, %v700_v62  ;;  %v740_v0 = vmul.f32 %v738_v60, %v700_v62 }
 0x2f3   : > { %v1468_v1 = vpop.f32.mrf.mxu0 }
 0x2f4   : > { %v732_v2 = vmul.f32 %v730_v61, %v724_v63  ;;  %v742_v3 = vmul.f32 %v740_v0, %v730_v61 }
 0x2f5   : > { %v703_v4 = vpop.f32.mrf.mxu0 }
 0x2f6   : > { %v725_v5 = vmul.f32 %v722_v59, %v703_v4  ;;  %v741_v6 = vmul.f32 %v738_v60, %v703_v4  ;;  %746 = vrot.lane.b32.xlu0 %v742_v3, %s1716_s27 }
 0x2f7   : > { %v1469_v7 = vpop.f32.mrf.mxu0 }
 0x2f8   : > { %v733_v8 = vmul.f32 %v730_v61, %v725_v5  ;;  %v743_v9 = vmul.f32 %v741_v6, %v730_v61 }
 0x2fa   : > { %748 = vrot.lane.b32.xlu1 %v743_v9, %s1716_s27 }
 0x2fe   : > { %760 = vrot.lane.b32.xlu1 %v759_v10, %s1716_s27 }
 0x302   : > { %764 = vrot.lane.b32.xlu1 %v738_v60, %s1716_s27 }
 0x368   : > { %v747_v11 = vpop.permute.xlu0 %746 }
 0x369   : > { %v753_v15 = vsel %vm752_vm6, %v732_v2, %v747_v11 }
 0x36a   : > { %v773_v19 = vrot.slane %v753_v15, 7 }
 0x36c   : > { %v749_v16 = vpop.permute.xlu1 %748 }
 0x36d   : > { %v754_v17 = vsel %vm752_vm6, %v733_v8, %v749_v16 }
 0x36e   : > { %v774_v20 = vrot.slane %v754_v17, 7 }
 0x370   : > { %v761_v21 = vpop.permute.xlu1 %760  ;;  %v776_v22 = vsel %vm775_vm7, %v773_v19, %v774_v20  ;;  %v777_v23 = vsel %vm775_vm7, %v774_v20, %v773_v19 }
 0x371   : > { %v763_v24 = vsel %vm752_vm6, %v713_v56, %v761_v21  ;;  %786 = vrot.lane.b32.xlu1 %v776_v22, %s1716_s27  ;;  %v782_v25 = vsel %vm771_vm8, %v777_v23, 0.0 }
 0x372   : > { %v791_v27 = vrot.slane %v763_v24, %v1954_v58  ;;  %784 = vrot.lane.b32.xlu0 %v782_v25, %s1716_s27  ;;  %v808_v48 = vmul.f32 %v763_v24, %v763_v24 }
 0x374   : > { %v793_v29 = vmul.f32 %v791_v27, %v776_v22  ;;  %v792_v30 = vmul.f32 %v791_v27, %v782_v25  ;;  %v765_v31 = vpop.permute.xlu1 %764 }
 0x375   : > { %v767_v32 = vsel %vm752_vm6, %v716_v26, %v765_v31  ;;  %804 = vrot.lane.b32.xlu1 %v763_v24, %s1716_s27 }
 0x376   : > { %806 = vrot.lane.b32.xlu0 %v767_v32, %s1716_s27  ;;  %v795_v33 = vadd.f32 %v793_v29, %v754_v17  ;;  %v794_v34 = vadd.f32 %v792_v30, %v753_v15  ;;  %v799_v35 = vrot.slane %v767_v32, %v1954_v58  ;;  %v1581_v29 = vld [vmem:[%s1884_s14 + $0x10] sm:$0xff]  }
 0x377   : > { %1473 = vmatpush3.bf16.msra.mxu1 %v1581_v29 }
 0x378   : > { %1474 = vmatprep.subr.bf16.mxu1 %v1714_v28 }
 0x3e3   : > { %v787_v36 = vpop.permute.xlu1 %786 }
 0x3e4   : > { %v801_v37 = vmul.f32 %v799_v35, %v787_v36  ;;  %v785_v40 = vpop.permute.xlu0 %784  ;;  %v1582_v36 = vld [vmem:[%s1884_s14 + $0x8] sm:$0xff]  }
 0x3e5   : > { %v800_v41 = vmul.f32 %v799_v35, %v785_v40  ;;  %1475 = vmatpush3.bf16.msra.mxu1 %v1582_v36 }
 0x3e6   : > { %v803_v42 = vadd.f32 %v801_v37, %v795_v33  ;;  %1476 = vmatprep.subr.bf16.mxu1 %v1714_v28 }
 0x3e7   : > { %v802_v43 = vadd.f32 %v800_v41, %v794_v34  ;;  %v805_v44 = vpop.permute.xlu1 %804 }
 0x3e8   : > { %v816_v45 = vrot.slane %v803_v42, 6  ;;  %v807_v46 = vpop.permute.xlu0 %806  ;;  %v811_v50 = vadd.f32 %v805_v44, %v763_v24 }
 0x3e9   : > { %v815_v47 = vrot.slane %v802_v43, 6  ;;  %v809_v49 = vmul.f32 %v807_v46, %v767_v32 }
 0x3ea   : > { %v812_v57 = vmul.f32 %v811_v50, %v767_v32 }
 0x3eb   : > { %v810_v51 = vadd.f32 %v809_v49, %v808_v48  ;;  %v818_v52 = vsel %vm817_vm9, %v815_v47, %v816_v45  ;;  %v819_v53 = vsel %vm817_vm9, %v816_v45, %v815_v47 }
 0x3ec   : > { %828 = vrot.lane.b32.xlu1 %v818_v52, %s1716_s27  ;;  %v824_v54 = vsel %vm813_vm10, %v819_v53, 0.0  ;;  %v841_v63 = vrot.slane %v812_v57, %v1954_v58 }
 0x3ed   : > { %v833_v56 = vrot.slane %v810_v51, %v1954_v58  ;;  %826 = vrot.lane.b32.xlu0 %v824_v54, %s1716_s27  ;;  %v850_v8 = vmul.f32 %v810_v51, %v810_v51 }
 0x3ef   : > { %v835_v59 = vmul.f32 %v833_v56, %v818_v52  ;;  %v834_v60 = vmul.f32 %v833_v56, %v824_v54 }
 0x3f0   : > { %848 = vrot.lane.b32.xlu1 %v812_v57, %s1716_s27 }
 0x3f1   : > { %846 = vrot.lane.b32.xlu0 %v810_v51, %s1716_s27  ;;  %v837_v61 = vadd.f32 %v835_v59, %v803_v42  ;;  %v836_v62 = vadd.f32 %v834_v60, %v802_v43  ;;  %v1583_v43 = vld [vmem:[%s1884_s14] sm:$0xff]  }
 0x3f2   : > { %1477 = vmatpush3.bf16.msra.mxu1 %v1583_v43 }
 0x45e   : > { %v829_v0 = vpop.permute.xlu1 %828 }
 0x45f   : > { %v843_v1 = vmul.f32 %v841_v63, %v829_v0  ;;  %v827_v2 = vpop.permute.xlu0 %826 }
 0x460   : > { %v842_v3 = vmul.f32 %v841_v63, %v827_v2 }
 0x461   : > { %v845_v4 = vadd.f32 %v843_v1, %v837_v61  ;;  %v1584_v61 = vld [vmem:[%s1893_s23 + $0x8] sm:$0xff]  }
 0x462   : > { %v844_v5 = vadd.f32 %v842_v3, %v836_v62  ;;  %v849_v6 = vpop.permute.xlu1 %848  ;;  %1483 = vmatpush3.bf16.msra.mxu0 %v1584_v61  ;;  %v1419_v62 = vld [vmem:[%s530_s26] ss:$0 sm:$0xff] }
 0x463   : > { %v858_v7 = vrot.slane %v845_v4, 4  ;;  %v851_v9 = vmul.f32 %v849_v6, %v812_v57  ;;  %v847_v10 = vpop.permute.xlu0 %846  ;;  %1484 = vmatprep.subr.bf16.mxu0 %v1714_v28  ;;  %v941_v63 = vmul.f32 %v1419_v62, %v1932_v38 }
 0x464   : > { %v857_v11 = vrot.slane %v844_v5, 4  ;;  %v853_v12 = vadd.f32 %v847_v10, %v810_v51 }
 0x465   : > { %v852_v15 = vadd.f32 %v851_v9, %v850_v8 }
 0x466   : > { %v854_v16 = vmul.f32 %v853_v12, %v812_v57  ;;  %v861_v17 = vsel %vm859_vm11, %v858_v7, %v857_v11  ;;  %v860_v18 = vsel %vm859_vm11, %v857_v11, %v858_v7 }
 0x467   : > { %v866_v19 = vsel %vm855_vm12, %v861_v17, 0.0  ;;  %v875_v20 = vrot.slane %v852_v15, %v1954_v58  ;;  %v892_v30 = vmul.f32 %v852_v15, %v852_v15 }
 0x468   : > { %890 = vrot.lane.b32.xlu1 %v854_v16, %s1716_s27  ;;  %868 = vrot.lane.b32.xlu0 %v866_v19, %s1716_s27  ;;  %v883_v25 = vrot.slane %v854_v16, %v1954_v58 }
 0x469   : > { %v876_v21 = vmul.f32 %v875_v20, %v866_v19  ;;  %v877_v22 = vmul.f32 %v875_v20, %v860_v18 }
 0x46b   : > { %v878_v23 = vadd.f32 %v876_v21, %v844_v5  ;;  %v879_v24 = vadd.f32 %v877_v22, %v845_v4  ;;  %v942_v4 = vmul.f32 %v1419_v62, %v1934_v39 }
 0x46c   : > { %888 = vrot.lane.b32.xlu0 %v852_v15, %s1716_s27  ;;  %870 = vrot.lane.b32.xlu1 %v860_v18, %s1716_s27 }
 0x470   : > { %905 = vrot.lane.b32.xlu0 %v1714_v28, %s1716_s27 }
 0x4da   : > { %v891_v26 = vpop.permute.xlu1 %890  ;;  %v869_v27 = vpop.permute.xlu0 %868 }
 0x4db   : > { %v893_v31 = vmul.f32 %v891_v26, %v854_v16  ;;  %v884_v32 = vmul.f32 %v883_v25, %v869_v27 }
 0x4dd   : > { %v894_v33 = vadd.f32 %v893_v31, %v892_v30  ;;  %v886_v34 = vadd.f32 %v884_v32, %v878_v23 }
 0x4de   : > { %v871_v35 = vpop.permute.xlu1 %870  ;;  %v889_v45 = vpop.permute.xlu0 %888 }
 0x4df   : > { %v912_v37 = vrot.slane %v894_v33, %v1954_v58  ;;  %v885_v40 = vmul.f32 %v883_v25, %v871_v35  ;;  %907 = vrot.lane.b32.xlu1 %v886_v34, %s1716_s27  ;;  %v895_v46 = vadd.f32 %v889_v45, %v852_v15 }
 0x4e1   : > { %v887_v41 = vadd.f32 %v885_v40, %v879_v24  ;;  %v914_v42 = vmul.f32 %v912_v37, %v886_v34  ;;  %v896_v47 = vmul.f32 %v895_v46, %v854_v16  ;;  %v913_v50 = vmul.f32 0.0, %v912_v37 }
 0x4e2   : > { %v906_v49 = vpop.permute.xlu0 %905  ;;  %v1717_v46 = vmov -1.0  }
 0x4e3   : > { %v916_v44 = vadd.f32 %v914_v42, %v887_v41  ;;  %v920_v48 = vrot.slane %v896_v47, %v1954_v58  ;;  %v915_v53 = vadd.f32 %v913_v50, %v886_v34  ;;  %v1585_v58 = vld [vmem:[%s1893_s23] sm:$0xff]  }
 0x4e4   : > { %1485 = vmatpush3.bf16.msra.mxu0 %v1585_v58  ;;  %v1425_v58 = vld [vmem:[%s538_s12] ss:$0 sm:$0xff] }
 0x4e5   : > { %v921_v51 = vmul.f32 %v920_v48, %v906_v49 }
 0x4e7   : > { %v923_v56 = vadd.f32 %v921_v51, %v915_v53 }
 0x551   : > { %v908_v52 = vpop.permute.xlu1 %907 }
 0x552   : > { %v922_v54 = vmul.f32 %v920_v48, %v908_v52 }
 0x554   : > { %v924_v57 = vadd.f32 %v922_v54, %v916_v44 }
 0x556   : > { %v925_v59 = vpack.c.bf16 %v924_v57, %v923_v56 }
 0x558   : > { %944 = vrot.lane.b32.xlu0 %v925_v59, %s1716_s27 }
 0x5ca   : > { %v945_v60 = vpop.permute.xlu0 %944 }
 0x5cb   : > { %1479 = vmatmul.mubr.msk.bf16.vlgmr.msra.gmra.mxu1 %vm752_vm6, %v945_v60 }
 0x68b   : > { %v1007_v0 = vpop.f32.mrf.mxu1 }
 0x68c   : > { %v1008_v1 = vadd.f32 %v1007_v0, %v941_v63 }
 0x68d   : > { %v1480_v2 = vpop.f32.mrf.mxu1 }
 0x68e   : > { %v1016_v3 = vmul.f32 0.70710677, %v1008_v1  ;;  %v1014_v54 = vmul.f32 0.5, %v1008_v1 }
 0x68f   : > { %v1010_v5 = vpop.f32.mrf.mxu1 }
 0x690   : > { %v1022_v6 = vand.u32 2147483647, %v1016_v3  ;;  %v1011_v7 = vadd.f32 %v1010_v5, %v942_v4  ;;  %vm1018_vm13 = vcmp.ge.f32.partialorder %v1016_v3, 0.0 }
 0x691   : > { %v1481_v8 = vpop.f32.mrf.mxu1  ;;  %v1020_v47 = vsel %vm1018_vm13, 1.0, %v1717_v46 }
 0x692   : > { %v1024_v28 = vmul.f32 0.3275911, %v1022_v6  ;;  %v1017_v9 = vmul.f32 0.70710677, %v1011_v7  ;;  %v1050_v16 = vsub.f32 0.0, %v1022_v6  ;;  %v1015_v56 = vmul.f32 0.5, %v1011_v7 }
 0x694   : > { %v1026_v10 = vadd.f32 1.0, %v1024_v28  ;;  %v1023_v11 = vand.u32 2147483647, %v1017_v9  ;;  %v1052_v38 = vmul.f32 %v1050_v16, %v1022_v6  ;;  %vm1019_vm14 = vcmp.ge.f32.partialorder %v1017_v9, 0.0 }
 0x695   : > { %v1021_v51 = vsel %vm1019_vm14, 1.0, %v1717_v46 }
 0x696   : > { %1596 = vrcp.f32 %v1026_v10  ;;  %v1025_v12 = vmul.f32 0.3275911, %v1023_v11  ;;  %v1051_v17 = vsub.f32 0.0, %v1023_v11  ;;  %v1054_v20 = vmul.f32 1.442695, %v1052_v38 }
 0x698   : > { %v1027_v15 = vadd.f32 1.0, %v1025_v12  ;;  %v1053_v21 = vmul.f32 %v1051_v17, %v1023_v11 }
 0x69a   : > { %1598 = vrcp.f32 %v1027_v15  ;;  %v1056_v55 = vmul.f32 1.442695, %v1053_v21 }
 0x69b   : > { %1600 = vpow2.f32 %v1054_v20 }
 0x69c   : > { %1602 = vpow2.f32 %v1056_v55 }
 0x6a3   : > { %v1597_v18 = vpop.eup %1596 }
 0x6a4   : > { %v1032_v19 = vmul.f32 1.0614054, %v1597_v18 }
 0x6a6   : > { %v1034_v39 = vadd.f32 -1.4531521, %v1032_v19 }
 0x6a7   : > { %v1599_v22 = vpop.eup %1598 }
 0x6a8   : > { %v1036_v23 = vmul.f32 %v1597_v18, %v1034_v39  ;;  %v1033_v24 = vmul.f32 1.0614054, %v1599_v22  ;;  %v1601_v40 = vpop.eup %1600 }
 0x6a9   : > { %v1603_v45 = vpop.eup %1602 }
 0x6aa   : > { %v1038_v25 = vadd.f32 1.4214138, %v1036_v23  ;;  %v1035_v26 = vadd.f32 -1.4531521, %v1033_v24 }
 0x6ac   : > { %v1040_v27 = vmul.f32 %v1597_v18, %v1038_v25  ;;  %v1037_v29 = vmul.f32 %v1599_v22, %v1035_v26 }
 0x6ae   : > { %v1042_v30 = vadd.f32 -0.28449672, %v1040_v27  ;;  %v1039_v31 = vadd.f32 1.4214138, %v1037_v29 }
 0x6b0   : > { %v1044_v32 = vmul.f32 %v1597_v18, %v1042_v30  ;;  %v1041_v33 = vmul.f32 %v1599_v22, %v1039_v31 }
 0x6b2   : > { %v1046_v34 = vadd.f32 0.2548296, %v1044_v32  ;;  %v1043_v35 = vadd.f32 -0.28449672, %v1041_v33 }
 0x6b4   : > { %v1048_v36 = vmul.f32 %v1597_v18, %v1046_v34  ;;  %v1045_v37 = vmul.f32 %v1599_v22, %v1043_v35 }
 0x6b6   : > { %v1058_v41 = vmul.f32 %v1601_v40, %v1048_v36  ;;  %v1047_v42 = vadd.f32 0.2548296, %v1045_v37 }
 0x6b8   : > { %v1060_v43 = vsub.f32 1.0, %v1058_v41  ;;  %v1049_v44 = vmul.f32 %v1599_v22, %v1047_v42 }
 0x6ba   : > { %v1062_v48 = vmul.f32 %v1060_v43, %v1020_v47  ;;  %v1059_v49 = vmul.f32 %v1603_v45, %v1049_v44 }
 0x6bc   : > { %v1061_v50 = vsub.f32 1.0, %v1059_v49  ;;  %v1064_v52 = vadd.f32 1.0, %v1062_v48 }
 0x6be   : > { %v1063_v53 = vmul.f32 %v1061_v50, %v1021_v51  ;;  %v1066_v59 = vmul.f32 %v1064_v52, %v1014_v54 }
 0x6c0   : > { %v1065_v57 = vadd.f32 1.0, %v1063_v53 }
 0x6c2   : > { %v1067_v60 = vmul.f32 %v1065_v57, %v1015_v56 }
 0x6c4   : > { %v1068_v61 = vpack.c.bf16 %v1067_v60, %v1066_v59 }
 0x6c6   : > { %1487 = vmatmul.mubr.msk.bf16.vlgmr.msra.gmra.mxu0 %vm609_vm4, %v1068_v61 }
 0x786   : > { %v1129_v62 = vpop.f32.mrf.mxu0 }
 0x787   : > { %v1130_v63 = vadd.f32 %v1425_v58, %v1129_v62 }
 0x788   : > { %v1488_v0 = vpop.f32.mrf.mxu0 }
 0x789   : > { %v1136_v2 = vsub.f32 0.0, %v1130_v63 }
 0x78a   : > { %v1132_v3 = vpop.f32.mrf.mxu0 }
 0x78b   : > { %v1138_v4 = vmul.f32 1.442695, %v1136_v2  ;;  %v1133_v5 = vadd.f32 %v1425_v58, %v1132_v3 }
 0x78c   : > { %v1489_v1 = vpop.f32.mrf.mxu0 }
 0x78d   : > { %1604 = vpow2.f32 %v1138_v4  ;;  %v1137_v6 = vsub.f32 0.0, %v1133_v5 }
 0x78f   : > { %v1140_v7 = vmul.f32 1.442695, %v1137_v6 }
 0x791   : > { %1606 = vpow2.f32 %v1140_v7 }
 0x79a   : > { %v1605_v8 = vpop.eup %1604 }
 0x79b   : > { %v1142_v28 = vadd.f32 1.0, %v1605_v8 }
 0x79d   : > { %1608 = vrcp.f32 %v1142_v28 }
 0x79e   : > { %v1607_v9 = vpop.eup %1606 }
 0x79f   : > { %v1143_v10 = vadd.f32 1.0, %v1607_v9 }
 0x7a1   : > { %1610 = vrcp.f32 %v1143_v10 }
 0x7aa   : > { %v1609_v11 = vpop.eup %1608 }
 0x7ab   : > { %1148 = vrot.lane.b32.xlu1 %v1609_v11, %s1718_s30 }
 0x7ae   : > { %v1611_v12 = vpop.eup %1610 }
 0x7af   : > { %1150 = vrot.lane.b32.xlu0 %v1611_v12, %s1718_s30 }
 0x81d   : > { %v1149_v15 = vpop.permute.xlu1 %1148 }
 0x81e   : > { %v1154_v16 = vmul.f32 %v1149_v15, %v1130_v63 }
 0x820   : > { %v1156_v38 = vadd.f32 %v1154_v16, %v1910_v13 }
 0x821   : > { %v1151_v17 = vpop.permute.xlu0 %1150 }
 0x822   : > { %1158 = vst.msk [vmem:[#allocation2] sm:$0xff] %vm609_vm4, %v1156_v38  ;;  %v1155_v18 = vmul.f32 %v1151_v17, %v1133_v5  ;;  %1163 = sbr.rel (%p1429_p1) target bundleno = 2614 (0xa36), region = 76 }
 0x824   : > { %v1157_v19 = vadd.f32 %v1155_v18, %v1912_v14 }
 0x826   : > { %1159 = vst.msk [vmem:[#allocation2 + $0x8] sm:$0xff] %vm609_vm4, %v1157_v19 }
 0x827   : > { %v1612_v20 = vld [vmem:[%s2100_s10 + $0x8] sm:$0xff]   ;;  %v1719_v21 = vmov 0.0   ;;  %v1613_v13 = vld [vmem:[%s2100_s10] sm:$0xff]   ;;  %vm1720_vm15 = vmmov 0   ;;  %v1164_v14 = vsel %vm609_vm4, %v1156_v38, 0.0  ;;  %v1165_v39 = vsel %vm609_vm4, %v1157_v19, 0.0 }
 0x828   : > { %1490 = vmatprep.subr.bf16.mxu0 %v1719_v21  ;;  %1494 = vmatprep.mubr.msk.bf16.mxu0 %vm1720_vm15, %v1719_v21  ;;  %v1166_v22 = vadd.f32 %v1165_v39, %v1164_v14  ;;  %v1180_v31 = vld [vmem:[%s2135_s16] sm:$0x1]  ;;  %vm1236_vm0 = vcmask 57344  }
 0x829   : > { %1491 = vmatpush3.bf16.msra.mxu0 %v1612_v20 }
 0x82a   : > { %1492 = vmatprep.subr.bf16.mxu0 %v1719_v21  ;;  %v1167_v23 = vrot.slane %v1166_v22, 4 }
 0x82c   : > { %v1168_v24 = vadd.f32 %v1167_v23, %v1166_v22 }
 0x82d   : > { %1493 = vmatpush3.bf16.msra.mxu0 %v1613_v13 }
 0x82e   : > { %v1169_v55 = vrot.slane %v1168_v24, 2 }
 0x830   : > { %v1170_v25 = vadd.f32 %v1169_v55, %v1168_v24 }
 0x832   : > { %v1171_v26 = vrot.slane %v1170_v25, 1 }
 0x834   : > { %v1172_v27 = vadd.f32 %v1171_v26, %v1170_v25 }
 0x836   : > { %v1174_v29 = vmul.f32 0.0625, %v1172_v27 }
 0x838   : > { %v1175_v30 = vpack.c.bf16 %v1174_v29, %v1174_v29 }
 0x83a   : > { %1495 = vmatmul.mubr.msk.bf16.vlgmr.msra.gmra.mxu0 %vm609_vm4, %v1175_v30 }
 0x8fa   : > { %v1230_v32 = vpop.f32.mrf.mxu0 }
 0x8fb   : > { %v1231_v33 = vadd.f32 %v1230_v32, %v1180_v31 }
 0x8fc   : > { %v1496_v34 = vpop.f32.mrf.mxu0 }
 0x8fd   : > { %v1237_v35 = vsel %vm1236_vm0, %v1231_v33, -inf }
 0x8fe   : > { %1238 = vmax.xlane.f32.xlu0 %v1237_v35  ;;  %v1233_v36 = vpop.f32.mrf.mxu0 }
 0x900   : > { %v1497_v37 = vpop.f32.mrf.mxu0 }
 0x987   : > { %v1239_v40 = vpop.xlane.xlu0 %1238 }
 0x988   : > { %v1240_v41 = vsub.f32 %v1231_v33, %v1239_v40 }
 0x98a   : > { %v1241_v42 = vmul.f32 1.442695, %v1240_v41 }
 0x98c   : > { %1614 = vpow2.f32 %v1241_v42 }
 0x999   : > { %v1615_v43 = vpop.eup %1614 }
 0x99a   : > { %v1243_v44 = vsel %vm1236_vm0, %v1615_v43, 0.0 }
 0x99b   : > { %1244 = vadd.xlane.f32.xlu0 %v1243_v44 }
 0xa24   : > { %v1245_v45 = vpop.xlane.xlu0 %1244 }
 0xa25   : > { %1616 = vrcp.f32 %v1245_v45 }
 0xa32   : > { %v1617_v46 = vpop.eup %1616 }
 0xa33   : > { %v1247_v47 = vmul.f32 %v1617_v46, %v1615_v43 }
 0xa35   : > { %1248 = vst.msk [vmem:[%s1901_s0] sm:$0x1] %vm1236_vm0, %v1247_v47 }
 0xa36 PF: > { %s2136_s13 = sld [smem:[#allocation8_spill]]  ;;  %s1262_s14 = sshll.u32 %s1901_s0, 4  ;;  %s1263_s14 = int_to_ptr.vmem [resolvable:$true] %s1262_s14 }
 0xa37   : > { %s2138_s18 = sld [smem:[#allocation19_spill]]  ;;  %s2139_s19 = sand.u32 1, %s1686_s22  }
 0xa38   : > { %s1250_s26 = scalar_lea.sflag [#allocation4], %s2139_s19  ;;  %s1618_s23 = scalar_lea.vmem %s1263_s14, 16 }
 0xa39   : > { %p1619_p2 = scmp.ne.s32.totalorder %s1263_s14, %s1618_s23  ;;  %s1721_s30 = smov [#allocation3]  }
 0xa3a   : > { %s1622_s12 = sshll.u32 %s1721_s30, 4  ;;  %s1623_s12 = int_to_ptr.vmem [resolvable:$false] %s1622_s12 }
 0xa3b   : > { %p1620_p4 = pnand %p1619_p2, %p1836_p3  ;;  %s1624_s28 = scalar_lea.vmem %s1623_s12, 32 }
 0xa3c   : > { %s1433_s20 = sshll.u32 %s2136_s13, 4  ;;  %p1625_p6 = scmp.lt.s32.totalorder %s1263_s14, %s1623_s12 }
 0xa3d   : > { %s1260_s27 = scalar_lea.hbm %s2138_s18, %s1433_s20  ;;  %p1621_p5 = pneg %p1620_p4 }
 0xa3e   : > { %p1626_p7 = scmp.lt.s32.totalorder %s1624_s28, %s1618_s23 }
 0xa40   : > { %p1627_p8 = por %p1626_p7, %p1625_p6 }
 0xa42   : > { %p1628_p10 = pnand %p1627_p8, %p1621_p5 }
 0xa44   : > { %1631 = shalt.err (!%p1628_p10)
}
 0xa45   : > { %s1632_s11 = scalar_lea.hbm %s1260_s27, 16  ;;  %s1636_s24 = scalar_lea.hbm %s2138_s18, 64 }
 0xa46   : > { %p1633_p11 = scmp.ne.s32.totalorder %s1260_s27, %s1632_s11  ;;  %p1637_p0 = scmp.lt.s32.totalorder %s1260_s27, %s2138_s18 }
 0xa47   : > { %p1638_p1 = scmp.lt.s32.totalorder %s1636_s24, %s1632_s11 }
 0xa48   : > { %p1634_p12 = pnand %p1633_p11, %p1836_p3 }
 0xa49   : > { %p1639_p2 = por %p1638_p1, %p1637_p0 }
 0xa4a   : > { %p1635_p13 = pneg %p1634_p12 }
 0xa4c   : > { %p1640_p4 = pnand %p1639_p2, %p1635_p13 }
 0xa4e   : > { %1643 = shalt.err (!%p1640_p4)
}
 0xa4f   : > { %1498 = dma.vmem_to_hbm [thread:$0]  (%p1836_p3), %s1263_s14, 16, %s1260_s27, %s1250_s26  }
 0xa50 PF: > { %s2140_s13 = sld [smem:[#allocation11_spill]] }
 0xa51   : > { %s2141_s20 = sld [smem:[#allocation6_spill]] }
 0xa56   : > { %p1504_p5 = scmp.ge.s32.totalorder %s2140_s13, 2 }
 0xa57   : > { %s1274_s17 = sand.u32 1, %s2141_s20  }
 0xa58   : > { %p1501_p6 = pnand %p1504_p5, %p1846_p9  ;;  %s1275_s19 = scalar_lea.sflag [#allocation4], %s1274_s17 }
 0xa5a   : > { %p1502_p7 = pneg %p1501_p6 }
 0xa5c   : > { %1677 = dma.done.wait (%p1502_p7), %s1275_s19, 16  }
 0xa5d   : > { %1679 = vsyncadd (%p1502_p7), %s1275_s19, 4294967280  ;;  %s25_s28 = sadd.s32 1, %s2140_s13   ;;  %s2143_s23 = sld [smem:[#allocation7_spill]] }
 0xa5e   : > { %p22_p8 = scmp.ge.s32.totalorder %s25_s28, 10   ;;  %s2144_s30 = sld [smem:[#allocation16_spill]] }
 0xa5f   : > { %s2145_s24 = sld [smem:[#allocation9_spill]]  ;;  %s2149_s21 = smov %s1686_s22 }
 0xa60   : > { %s2146_s25 = sld [smem:[#allocation10_spill]]  ;;  %24 = sbr.rel (!%p22_p8) target bundleno = 9 (0x9), region = 132 }
 0xa61   : > { %s2147_s26 = sld [smem:[#allocation12_spill]] }
 0xa62   : > { %s2148_s27 = sld [smem:[#allocation14_spill]] }
 0xa63   : > { %s2150_s22 = smov %s2143_s23 }
 0xa64   : > { %s2151_s23 = smov %s2144_s30 }
 0xa65   :  { %1279 = vsyncpa [#allocation4], 1 }
 0xa66   :  { %1281 = vsyncpa [#allocation4 + $0x1], 1 }

</bundles_post_ra>
